<compile_context>
chip_gen: v7x
topology: tpu7x:2x2x1
jax: 0.10.0
libtpu: 0.0.40
codegen_flags: <defaults>
</compile_context>

<pallas_src>
import functools

import jax
import jax.numpy as jnp
from jax.experimental import pallas as pl
from jax.experimental.pallas import tpu as pltpu


def _round_up(x, m):
    return (x + m - 1) // m * m


# --------------------------------------------------------------------------
# Kernel 1: one bidirectional-LSTM SeqEncoder pass per grid step
# --------------------------------------------------------------------------
def bilstm_encoder_kernel(x_ref, win_ref, whh_ref, b_ref, out_ref, xw_scr,
                          *, T, Bp, H):
    H2, H6 = 2 * H, 6 * H

    # Hoisted input projection for BOTH directions in one bf16 MXU matmul,
    # with the folded (b_ih + b_hh) bias added once.  Row block t of the
    # scratch holds [fwd gate pre-acts at time t | bwd gate pre-acts at time
    # T-1-t] because the bwd input stream was time-reversed in the wrapper.
    xw_scr[...] = (
        jnp.dot(x_ref[0], win_ref[0], preferred_element_type=jnp.float32)
        + b_ref[0])

    whh = whh_ref[0]                       # (2H, 8H) block-diag [fwd|bwd], bf16

    def step(t, carry):
        h, c, mx = carry                   # (Bp, 2H) each, [fwd | bwd] lanes
        row = pl.multiple_of(t * Bp, Bp)   # sublane-aligned (Bp == 8)
        pre = xw_scr[pl.ds(row, Bp), :] + jnp.dot(
            h.astype(whh.dtype), whh, preferred_element_type=jnp.float32)
        # gate columns: [i_f,i_b,f_f,f_b,o_f,o_b,g_f,g_b]; one sigmoid + one
        # tanh cover both directions (EUP work halved vs per-direction gates).
        sig = jax.nn.sigmoid(pre[:, :H6])
        g = jnp.tanh(pre[:, H6:])
        i, f, o = sig[:, :H2], sig[:, H2:2 * H2], sig[:, 2 * H2:]
        c = f * c + i * g
        h = o * jnp.tanh(c)
        return h, c, jnp.maximum(mx, h)    # running max-pool over time

    zeros = jnp.zeros((Bp, H2), jnp.float32)
    _, _, mx = jax.lax.fori_loop(
        0, T, step, (zeros, zeros, jnp.full((Bp, H2), -jnp.inf, jnp.float32)),
        unroll=T <= 16)                    # unroll only short static loops

    out_ref[0] = jnp.tanh(mx)              # (Bp, 2H) = [fwd | bwd], as PyTorch


def encode_all(x_cat, w_in, w_hh, b, *, T, Bp):
    """All 5 encoder passes in one pallas_call (grid over the encoder axis)."""
    NE, TB, E2 = x_cat.shape
    H8 = w_in.shape[2]
    H = H8 // 8
    shared = lambda e: (jnp.minimum(e, 3), 0, 0)   # desc weights reused by 3,4
    kernel = functools.partial(bilstm_encoder_kernel, T=T, Bp=Bp, H=H)
    return pl.pallas_call(
        kernel,
        out_shape=jax.ShapeDtypeStruct((NE, Bp, 2 * H), jnp.float32),
        grid=(NE,),
        in_specs=[
            pl.BlockSpec((1, TB, E2), lambda e: (e, 0, 0)),    # [x_t | x_rev_t]
            pl.BlockSpec((1, E2, H8), shared),                 # input proj
            pl.BlockSpec((1, 2 * H, H8), shared),              # recurrent (bd)
            pl.BlockSpec((1, 1, H8), shared),                  # folded bias
        ],
        out_specs=pl.BlockSpec((1, Bp, 2 * H), lambda e: (e, 0, 0)),
        scratch_shapes=[pltpu.VMEM((TB, H8), jnp.float32)],
        compiler_params=pltpu.CompilerParams(
            dimension_semantics=("parallel",),
            vmem_limit_bytes=32 * 1024 * 1024),
    )(x_cat, w_in, w_hh, b)


# --------------------------------------------------------------------------
# Kernel 2: fused  Linear+tanh  ->  cosine similarities  ->  margin loss
# --------------------------------------------------------------------------
def fuse_loss_kernel(code_ref, desc_ref, w_ref, b_ref, out_ref, *, margin):
    # code_repr = tanh(cat(name, api, tok) @ W + b): the concat arrives as a
    # single lane-dense (B, 6H) operand -> ONE K=6H MXU matmul.
    code = jnp.tanh(
        jnp.dot(code_ref[...], w_ref[...], preferred_element_type=jnp.float32)
        + b_ref[...])
    good, bad = desc_ref[0], desc_ref[1]

    eps = jnp.float32(1e-8)
    cn = jnp.maximum(jnp.sqrt(jnp.sum(code * code, axis=1, keepdims=True)), eps)
    gn = jnp.maximum(jnp.sqrt(jnp.sum(good * good, axis=1, keepdims=True)), eps)
    bn = jnp.maximum(jnp.sqrt(jnp.sum(bad * bad, axis=1, keepdims=True)), eps)
    good_sim = jnp.sum(code * good, axis=1, keepdims=True) / (cn * gn)
    bad_sim = jnp.sum(code * bad, axis=1, keepdims=True) / (cn * bn)

    loss = jnp.maximum(jnp.float32(margin) - good_sim + bad_sim,
                       jnp.float32(1e-6))                          # (B, 1)
    out_ref[...] = (jnp.sum(loss, axis=0, keepdims=True)
                    / jnp.float32(loss.shape[0]))


def fuse_and_loss(code_cat, desc, fuse_w, fuse_b, margin):
    kernel = functools.partial(fuse_loss_kernel, margin=float(margin))
    vspec = pl.BlockSpec(memory_space=pltpu.MemorySpace.VMEM)
    return pl.pallas_call(
        kernel,
        out_shape=jax.ShapeDtypeStruct((1, 1), jnp.float32),
        in_specs=[vspec] * 4,
        out_specs=vspec,
    )(code_cat, desc, fuse_w, fuse_b)


# --------------------------------------------------------------------------
# Parameter init (PyTorch-layout synthetic weights packed to kernel layout)
# --------------------------------------------------------------------------
_GATE_ROW = {"i": 0, "f": 1, "g": 2, "o": 3}        # PyTorch W_ih/W_hh row blocks
_COL_ORDER = (("i", 0), ("i", 1), ("f", 0), ("f", 1),
              ("o", 0), ("o", 1), ("g", 0), ("g", 1))   # dir 0 = fwd, 1 = bwd


def _pack_encoder(key, vocab, E, H):
    ks = jax.random.split(key, 9)
    w = lambda k, s: 0.1 * jax.random.normal(k, s, jnp.float32)
    # TODO(synk): PyTorch applies nn.init.orthogonal_ to the LSTM matrices;
    # synthetic normal init is used (forward semantics don't depend on init).
    emb = w(ks[0], (vocab, E)).at[0].set(0.0)       # padding_idx=0
    wih = [w(ks[1 + d], (4 * H, E)) for d in range(2)]
    whh = [w(ks[3 + d], (4 * H, H)) for d in range(2)]
    bih = [w(ks[5 + d], (4 * H,)) for d in range(2)]
    bhh = [w(ks[7 + d], (4 * H,)) for d in range(2)]

    w_in = jnp.zeros((2 * E, 8 * H), jnp.float32)   # rows: [x_fwd | x_bwd]
    w_rec = jnp.zeros((2 * H, 8 * H), jnp.float32)  # rows: [h_fwd | h_bwd]
    bias = jnp.zeros((1, 8 * H), jnp.float32)
    for k, (gate, d) in enumerate(_COL_ORDER):
        r = _GATE_ROW[gate] * H
        cols = slice(k * H, (k + 1) * H)
        w_in = w_in.at[d * E:(d + 1) * E, cols].set(wih[d][r:r + H, :].T)
        w_rec = w_rec.at[d * H:(d + 1) * H, cols].set(whh[d][r:r + H, :].T)
        bias = bias.at[0, cols].set(bih[d][r:r + H] + bhh[d][r:r + H])
    return dict(emb=emb, w_in=w_in, w_hh=w_rec, b=bias)


def init_joint_embedding(key, config):
    H, E, V = config["lstm_dims"], config["emb_size"], config["n_words"]
    ks = jax.random.split(key, 6)
    # encoder slots: 0=name, 1=api, 2=tok, 3=desc (shared by good/bad passes).
    encs = [_pack_encoder(ks[i], V, E, H) for i in range(4)]
    params = {k: jnp.stack([enc[k] for enc in encs], 0) for k in encs[0]}
    w = lambda k, s: 0.1 * jax.random.normal(k, s, jnp.float32)
    params["fuse_w"] = w(ks[4], (6 * H, config["n_hidden"]))   # pre-transposed
    params["fuse_b"] = w(ks[5], (1, config["n_hidden"]))
    return params


# --------------------------------------------------------------------------
# Full forward
# --------------------------------------------------------------------------
def joint_embedding_forward(params, name, apiseq, tokens, desc_good, desc_bad,
                            margin):
    ids = jnp.stack([name, apiseq, tokens, desc_good, desc_bad],
                    axis=0).astype(jnp.int32)                     # (5, B, T)
    NE, B, T = ids.shape
    H = params["w_hh"].shape[1] // 2
    E = params["emb"].shape[2]
    Bp = _round_up(B, 8)                     # sublane-aligned batch padding
    if params["fuse_w"].shape[1] != 2 * H:
        raise ValueError("cosine_similarity requires n_hidden == 2*lstm_dims")

    # Embedding lookup as a plain XLA gather (row 0 is zero => padding_idx=0);
    # the (V, E) table never enters VMEM.  Slot 3 (desc) serves both passes.
    slot = jnp.array([0, 1, 2, 3, 3], jnp.int32)
    x = params["emb"][slot[:, None, None], ids]                   # (5, B, T, E)
    # TODO(synk): F.dropout(p=0.25) on embeddings / LSTM output is stochastic;
    # eval-mode (identity) semantics are implemented.

    xf = jnp.transpose(x, (0, 2, 1, 3))                           # (5, T, B, E)
    xb = jnp.flip(xf, axis=1)                                     # bwd stream
    pad = ((0, 0), (0, 0), (0, Bp - B), (0, 0))
    x_cat = jnp.concatenate([jnp.pad(xf, pad), jnp.pad(xb, pad)], axis=-1)
    x_cat = x_cat.reshape(NE, T * Bp, 2 * E).astype(jnp.bfloat16)

    enc = encode_all(x_cat, params["w_in"].astype(jnp.bfloat16),
                     params["w_hh"].astype(jnp.bfloat16), params["b"],
                     T=T, Bp=Bp)                                  # (5, Bp, 2H)
    enc = enc[:, :B, :]

    # lane-dense (B, 6H) [name|api|tok] operand for the fuse Linear.
    code_cat = jnp.transpose(enc[:3], (1, 0, 2)).reshape(B, 6 * H)
    loss = fuse_and_loss(code_cat.astype(jnp.bfloat16), enc[3:],
                         params["fuse_w"].astype(jnp.bfloat16),
                         params["fuse_b"], margin)
    return loss[0, 0]


if __name__ == "__main__":
    config = dict(
        n_words=50,
        emb_size=32,
        lstm_dims=32,
        n_hidden=64,      # == 2*lstm_dims so the cosine-similarity dims match
        margin=0.05,
    )
    B, T = 2, 8

    key = jax.random.PRNGKey(0)
    kp, k1, k2, k3, k4, k5 = jax.random.split(key, 6)
    params = init_joint_embedding(kp, config)

    name = jax.random.randint(k1, (B, T), 0, config["n_words"], jnp.int32)
    apiseq = jax.random.randint(k2, (B, T), 0, config["n_words"], jnp.int32)
    tokens = jax.random.randint(k3, (B, T), 0, config["n_words"], jnp.int32)
    desc_good = jax.random.randint(k4, (B, T), 0, config["n_words"], jnp.int32)
    desc_bad = jax.random.randint(k5, (B, T), 0, config["n_words"], jnp.int32)

    fwd = jax.jit(joint_embedding_forward, static_argnames=("margin",))
    loss = fwd(params, name, apiseq, tokens, desc_good, desc_bad,
               margin=config["margin"])
    jax.block_until_ready(loss)
    assert loss.shape == () and jnp.isfinite(loss)
    print("KERNEL_OK")
</pallas_src>

<mosaic_0001>
module attributes {stable_mosaic.version = 11 : i64} {
  func.func @bilstm_encoder_kernel(%arg0: i32, %arg1: memref<1x64x64xbf16, #tpu.memory_space<vmem>>, %arg2: memref<1x64x256xbf16, #tpu.memory_space<vmem>>, %arg3: memref<1x64x256xbf16, #tpu.memory_space<vmem>>, %arg4: memref<1x1x256xf32, #tpu.memory_space<vmem>>, %arg5: memref<1x8x64xf32, #tpu.memory_space<vmem>>, %arg6: memref<64x256xf32, #tpu.memory_space<vmem>>) attributes {dimension_semantics = [#tpu.dimension_semantics<parallel>], iteration_bounds = array<i64: 5>, scalar_prefetch = 0 : i64, scratch_operands = 1 : i64, tpu.core_type = #tpu.core_type<tc>, window_params = [{transform_indices = @transform_0, window_bounds = array<i64: 1, 64, 64>}, {transform_indices = @transform_1, window_bounds = array<i64: 1, 64, 256>}, {transform_indices = @transform_2, window_bounds = array<i64: 1, 64, 256>}, {transform_indices = @transform_3, window_bounds = array<i64: 1, 1, 256>}, {transform_indices = @transform_4, window_bounds = array<i64: 1, 8, 64>}]} {
    %c0 = arith.constant 0 : index
    %c0_0 = arith.constant 0 : index
    %c0_1 = arith.constant 0 : index
    %0 = vector.load %arg1[%c0, %c0_0, %c0_1] : memref<1x64x64xbf16, #tpu.memory_space<vmem>>, vector<1x64x64xbf16>
    %1 = vector.shape_cast %0 : vector<1x64x64xbf16> to vector<64x64xbf16>
    %c0_2 = arith.constant 0 : index
    %c0_3 = arith.constant 0 : index
    %c0_4 = arith.constant 0 : index
    %2 = vector.load %arg2[%c0_2, %c0_3, %c0_4] : memref<1x64x256xbf16, #tpu.memory_space<vmem>>, vector<1x64x256xbf16>
    %3 = vector.shape_cast %2 : vector<1x64x256xbf16> to vector<64x256xbf16>
    %cst = arith.constant dense<0.000000e+00> : vector<64x256xf32>
    %4 = tpu.matmul %1, %3, %cst {dimension_numbers = #tpu.dot_dimension_numbers<[1], [0], [0], [1], [0, 0, 1, 1], [], []>} : vector<64x64xbf16>, vector<64x256xbf16>, vector<64x256xf32> -> vector<64x256xf32>
    %c0_5 = arith.constant 0 : index
    %c0_6 = arith.constant 0 : index
    %c0_7 = arith.constant 0 : index
    %5 = vector.load %arg4[%c0_5, %c0_6, %c0_7] : memref<1x1x256xf32, #tpu.memory_space<vmem>>, vector<1x1x256xf32>
    %6 = vector.shape_cast %5 : vector<1x1x256xf32> to vector<1x256xf32>
    %7 = vector.broadcast %6 : vector<1x256xf32> to vector<64x256xf32>
    %8 = arith.addf %4, %7 : vector<64x256xf32>
    %c0_8 = arith.constant 0 : index
    %c0_9 = arith.constant 0 : index
    %9 = vector.load %arg6[%c0_8, %c0_9] : memref<64x256xf32, #tpu.memory_space<vmem>>, vector<64x256xf32>
    tpu.vector_store %arg6[%c0_8, %c0_9], %8 {strides = array<i32>} : memref<64x256xf32, #tpu.memory_space<vmem>>, vector<64x256xf32>,
    %c0_10 = arith.constant 0 : index
    %c0_11 = arith.constant 0 : index
    %c0_12 = arith.constant 0 : index
    %10 = vector.load %arg3[%c0_10, %c0_11, %c0_12] : memref<1x64x256xbf16, #tpu.memory_space<vmem>>, vector<1x64x256xbf16>
    %11 = vector.shape_cast %10 : vector<1x64x256xbf16> to vector<64x256xbf16>
    %cst_13 = arith.constant 0.000000e+00 : f32
    %12 = vector.broadcast %cst_13 : f32 to vector<8x64xf32>
    %cst_14 = arith.constant 0xFF800000 : f32
    %13 = vector.broadcast %cst_14 : f32 to vector<8x64xf32>
    %c0_i32 = arith.constant 0 : i32
    %c8_i32 = arith.constant 8 : i32
    %14 = arith.muli %c0_i32, %c8_i32 : i32
    %15 = tpu.assume_multiple %14, 8 : i32
    %16 = arith.index_cast %15 : i32 to index
    %c0_15 = arith.constant 0 : index
    %17 = vector.load %arg6[%16, %c0_15] : memref<64x256xf32, #tpu.memory_space<vmem>>, vector<8x256xf32>
    %18 = arith.truncf %12 : vector<8x64xf32> to vector<8x64xbf16>
    %cst_16 = arith.constant dense<0.000000e+00> : vector<8x256xf32>
    %19 = tpu.matmul %18, %11, %cst_16 {dimension_numbers = #tpu.dot_dimension_numbers<[1], [0], [0], [1], [0, 0, 1, 1], [], []>} : vector<8x64xbf16>, vector<64x256xbf16>, vector<8x256xf32> -> vector<8x256xf32>
    %20 = arith.addf %17, %19 : vector<8x256xf32>
    %21 = vector.extract_strided_slice %20 {offsets = [0, 0], sizes = [8, 192], strides = [1, 1]} : vector<8x256xf32> to vector<8x192xf32>
    %22 = arith.negf %21 : vector<8x192xf32>
    %23 = math.exp %22 : vector<8x192xf32>
    %cst_17 = arith.constant 1.000000e+00 : f32
    %24 = vector.broadcast %cst_17 : f32 to vector<8x192xf32>
    %25 = arith.addf %24, %23 : vector<8x192xf32>
    %26 = arith.divf %24, %25 : vector<8x192xf32>
    %27 = vector.extract_strided_slice %20 {offsets = [0, 192], sizes = [8, 64], strides = [1, 1]} : vector<8x256xf32> to vector<8x64xf32>
    %28 = math.tanh %27 : vector<8x64xf32>
    %29 = vector.extract_strided_slice %26 {offsets = [0, 0], sizes = [8, 64], strides = [1, 1]} : vector<8x192xf32> to vector<8x64xf32>
    %30 = vector.extract_strided_slice %26 {offsets = [0, 64], sizes = [8, 64], strides = [1, 1]} : vector<8x192xf32> to vector<8x64xf32>
    %31 = vector.extract_strided_slice %26 {offsets = [0, 128], sizes = [8, 64], strides = [1, 1]} : vector<8x192xf32> to vector<8x64xf32>
    %32 = arith.mulf %30, %12 : vector<8x64xf32>
    %33 = arith.mulf %29, %28 : vector<8x64xf32>
    %34 = arith.addf %32, %33 : vector<8x64xf32>
    %35 = math.tanh %34 : vector<8x64xf32>
    %36 = arith.mulf %31, %35 : vector<8x64xf32>
    %37 = arith.maximumf %13, %36 : vector<8x64xf32>
    %c1_i32 = arith.constant 1 : i32
    %c8_i32_18 = arith.constant 8 : i32
    %38 = arith.muli %c1_i32, %c8_i32_18 : i32
    %39 = tpu.assume_multiple %38, 8 : i32
    %40 = arith.index_cast %39 : i32 to index
    %c0_19 = arith.constant 0 : index
    %41 = vector.load %arg6[%40, %c0_19] : memref<64x256xf32, #tpu.memory_space<vmem>>, vector<8x256xf32>
    %42 = arith.truncf %36 : vector<8x64xf32> to vector<8x64xbf16>
    %cst_20 = arith.constant dense<0.000000e+00> : vector<8x256xf32>
    %43 = tpu.matmul %42, %11, %cst_20 {dimension_numbers = #tpu.dot_dimension_numbers<[1], [0], [0], [1], [0, 0, 1, 1], [], []>} : vector<8x64xbf16>, vector<64x256xbf16>, vector<8x256xf32> -> vector<8x256xf32>
    %44 = arith.addf %41, %43 : vector<8x256xf32>
    %45 = vector.extract_strided_slice %44 {offsets = [0, 0], sizes = [8, 192], strides = [1, 1]} : vector<8x256xf32> to vector<8x192xf32>
    %46 = arith.negf %45 : vector<8x192xf32>
    %47 = math.exp %46 : vector<8x192xf32>
    %cst_21 = arith.constant 1.000000e+00 : f32
    %48 = vector.broadcast %cst_21 : f32 to vector<8x192xf32>
    %49 = arith.addf %48, %47 : vector<8x192xf32>
    %50 = arith.divf %48, %49 : vector<8x192xf32>
    %51 = vector.extract_strided_slice %44 {offsets = [0, 192], sizes = [8, 64], strides = [1, 1]} : vector<8x256xf32> to vector<8x64xf32>
    %52 = math.tanh %51 : vector<8x64xf32>
    %53 = vector.extract_strided_slice %50 {offsets = [0, 0], sizes = [8, 64], strides = [1, 1]} : vector<8x192xf32> to vector<8x64xf32>
    %54 = vector.extract_strided_slice %50 {offsets = [0, 64], sizes = [8, 64], strides = [1, 1]} : vector<8x192xf32> to vector<8x64xf32>
    %55 = vector.extract_strided_slice %50 {offsets = [0, 128], sizes = [8, 64], strides = [1, 1]} : vector<8x192xf32> to vector<8x64xf32>
    %56 = arith.mulf %54, %34 : vector<8x64xf32>
    %57 = arith.mulf %53, %52 : vector<8x64xf32>
    %58 = arith.addf %56, %57 : vector<8x64xf32>
    %59 = math.tanh %58 : vector<8x64xf32>
    %60 = arith.mulf %55, %59 : vector<8x64xf32>
    %61 = arith.maximumf %37, %60 : vector<8x64xf32>
    %c2_i32 = arith.constant 2 : i32
    %c8_i32_22 = arith.constant 8 : i32
    %62 = arith.muli %c2_i32, %c8_i32_22 : i32
    %63 = tpu.assume_multiple %62, 8 : i32
    %64 = arith.index_cast %63 : i32 to index
    %c0_23 = arith.constant 0 : index
    %65 = vector.load %arg6[%64, %c0_23] : memref<64x256xf32, #tpu.memory_space<vmem>>, vector<8x256xf32>
    %66 = arith.truncf %60 : vector<8x64xf32> to vector<8x64xbf16>
    %cst_24 = arith.constant dense<0.000000e+00> : vector<8x256xf32>
    %67 = tpu.matmul %66, %11, %cst_24 {dimension_numbers = #tpu.dot_dimension_numbers<[1], [0], [0], [1], [0, 0, 1, 1], [], []>} : vector<8x64xbf16>, vector<64x256xbf16>, vector<8x256xf32> -> vector<8x256xf32>
    %68 = arith.addf %65, %67 : vector<8x256xf32>
    %69 = vector.extract_strided_slice %68 {offsets = [0, 0], sizes = [8, 192], strides = [1, 1]} : vector<8x256xf32> to vector<8x192xf32>
    %70 = arith.negf %69 : vector<8x192xf32>
    %71 = math.exp %70 : vector<8x192xf32>
    %cst_25 = arith.constant 1.000000e+00 : f32
    %72 = vector.broadcast %cst_25 : f32 to vector<8x192xf32>
    %73 = arith.addf %72, %71 : vector<8x192xf32>
    %74 = arith.divf %72, %73 : vector<8x192xf32>
    %75 = vector.extract_strided_slice %68 {offsets = [0, 192], sizes = [8, 64], strides = [1, 1]} : vector<8x256xf32> to vector<8x64xf32>
    %76 = math.tanh %75 : vector<8x64xf32>
    %77 = vector.extract_strided_slice %74 {offsets = [0, 0], sizes = [8, 64], strides = [1, 1]} : vector<8x192xf32> to vector<8x64xf32>
    %78 = vector.extract_strided_slice %74 {offsets = [0, 64], sizes = [8, 64], strides = [1, 1]} : vector<8x192xf32> to vector<8x64xf32>
    %79 = vector.extract_strided_slice %74 {offsets = [0, 128], sizes = [8, 64], strides = [1, 1]} : vector<8x192xf32> to vector<8x64xf32>
    %80 = arith.mulf %78, %58 : vector<8x64xf32>
    %81 = arith.mulf %77, %76 : vector<8x64xf32>
    %82 = arith.addf %80, %81 : vector<8x64xf32>
    %83 = math.tanh %82 : vector<8x64xf32>
    %84 = arith.mulf %79, %83 : vector<8x64xf32>
    %85 = arith.maximumf %61, %84 : vector<8x64xf32>
    %c3_i32 = arith.constant 3 : i32
    %c8_i32_26 = arith.constant 8 : i32
    %86 = arith.muli %c3_i32, %c8_i32_26 : i32
    %87 = tpu.assume_multiple %86, 8 : i32
    %88 = arith.index_cast %87 : i32 to index
    %c0_27 = arith.constant 0 : index
    %89 = vector.load %arg6[%88, %c0_27] : memref<64x256xf32, #tpu.memory_space<vmem>>, vector<8x256xf32>
    %90 = arith.truncf %84 : vector<8x64xf32> to vector<8x64xbf16>
    %cst_28 = arith.constant dense<0.000000e+00> : vector<8x256xf32>
    %91 = tpu.matmul %90, %11, %cst_28 {dimension_numbers = #tpu.dot_dimension_numbers<[1], [0], [0], [1], [0, 0, 1, 1], [], []>} : vector<8x64xbf16>, vector<64x256xbf16>, vector<8x256xf32> -> vector<8x256xf32>
    %92 = arith.addf %89, %91 : vector<8x256xf32>
    %93 = vector.extract_strided_slice %92 {offsets = [0, 0], sizes = [8, 192], strides = [1, 1]} : vector<8x256xf32> to vector<8x192xf32>
    %94 = arith.negf %93 : vector<8x192xf32>
    %95 = math.exp %94 : vector<8x192xf32>
    %cst_29 = arith.constant 1.000000e+00 : f32
    %96 = vector.broadcast %cst_29 : f32 to vector<8x192xf32>
    %97 = arith.addf %96, %95 : vector<8x192xf32>
    %98 = arith.divf %96, %97 : vector<8x192xf32>
    %99 = vector.extract_strided_slice %92 {offsets = [0, 192], sizes = [8, 64], strides = [1, 1]} : vector<8x256xf32> to vector<8x64xf32>
    %100 = math.tanh %99 : vector<8x64xf32>
    %101 = vector.extract_strided_slice %98 {offsets = [0, 0], sizes = [8, 64], strides = [1, 1]} : vector<8x192xf32> to vector<8x64xf32>
    %102 = vector.extract_strided_slice %98 {offsets = [0, 64], sizes = [8, 64], strides = [1, 1]} : vector<8x192xf32> to vector<8x64xf32>
    %103 = vector.extract_strided_slice %98 {offsets = [0, 128], sizes = [8, 64], strides = [1, 1]} : vector<8x192xf32> to vector<8x64xf32>
    %104 = arith.mulf %102, %82 : vector<8x64xf32>
    %105 = arith.mulf %101, %100 : vector<8x64xf32>
    %106 = arith.addf %104, %105 : vector<8x64xf32>
    %107 = math.tanh %106 : vector<8x64xf32>
    %108 = arith.mulf %103, %107 : vector<8x64xf32>
    %109 = arith.maximumf %85, %108 : vector<8x64xf32>
    %c4_i32 = arith.constant 4 : i32
    %c8_i32_30 = arith.constant 8 : i32
    %110 = arith.muli %c4_i32, %c8_i32_30 : i32
    %111 = tpu.assume_multiple %110, 8 : i32
    %112 = arith.index_cast %111 : i32 to index
    %c0_31 = arith.constant 0 : index
    %113 = vector.load %arg6[%112, %c0_31] : memref<64x256xf32, #tpu.memory_space<vmem>>, vector<8x256xf32>
    %114 = arith.truncf %108 : vector<8x64xf32> to vector<8x64xbf16>
    %cst_32 = arith.constant dense<0.000000e+00> : vector<8x256xf32>
    %115 = tpu.matmul %114, %11, %cst_32 {dimension_numbers = #tpu.dot_dimension_numbers<[1], [0], [0], [1], [0, 0, 1, 1], [], []>} : vector<8x64xbf16>, vector<64x256xbf16>, vector<8x256xf32> -> vector<8x256xf32>
    %116 = arith.addf %113, %115 : vector<8x256xf32>
    %117 = vector.extract_strided_slice %116 {offsets = [0, 0], sizes = [8, 192], strides = [1, 1]} : vector<8x256xf32> to vector<8x192xf32>
    %118 = arith.negf %117 : vector<8x192xf32>
    %119 = math.exp %118 : vector<8x192xf32>
    %cst_33 = arith.constant 1.000000e+00 : f32
    %120 = vector.broadcast %cst_33 : f32 to vector<8x192xf32>
    %121 = arith.addf %120, %119 : vector<8x192xf32>
    %122 = arith.divf %120, %121 : vector<8x192xf32>
    %123 = vector.extract_strided_slice %116 {offsets = [0, 192], sizes = [8, 64], strides = [1, 1]} : vector<8x256xf32> to vector<8x64xf32>
    %124 = math.tanh %123 : vector<8x64xf32>
    %125 = vector.extract_strided_slice %122 {offsets = [0, 0], sizes = [8, 64], strides = [1, 1]} : vector<8x192xf32> to vector<8x64xf32>
    %126 = vector.extract_strided_slice %122 {offsets = [0, 64], sizes = [8, 64], strides = [1, 1]} : vector<8x192xf32> to vector<8x64xf32>
    %127 = vector.extract_strided_slice %122 {offsets = [0, 128], sizes = [8, 64], strides = [1, 1]} : vector<8x192xf32> to vector<8x64xf32>
    %128 = arith.mulf %126, %106 : vector<8x64xf32>
    %129 = arith.mulf %125, %124 : vector<8x64xf32>
    %130 = arith.addf %128, %129 : vector<8x64xf32>
    %131 = math.tanh %130 : vector<8x64xf32>
    %132 = arith.mulf %127, %131 : vector<8x64xf32>
    %133 = arith.maximumf %109, %132 : vector<8x64xf32>
    %c5_i32 = arith.constant 5 : i32
    %c8_i32_34 = arith.constant 8 : i32
    %134 = arith.muli %c5_i32, %c8_i32_34 : i32
    %135 = tpu.assume_multiple %134, 8 : i32
    %136 = arith.index_cast %135 : i32 to index
    %c0_35 = arith.constant 0 : index
    %137 = vector.load %arg6[%136, %c0_35] : memref<64x256xf32, #tpu.memory_space<vmem>>, vector<8x256xf32>
    %138 = arith.truncf %132 : vector<8x64xf32> to vector<8x64xbf16>
    %cst_36 = arith.constant dense<0.000000e+00> : vector<8x256xf32>
    %139 = tpu.matmul %138, %11, %cst_36 {dimension_numbers = #tpu.dot_dimension_numbers<[1], [0], [0], [1], [0, 0, 1, 1], [], []>} : vector<8x64xbf16>, vector<64x256xbf16>, vector<8x256xf32> -> vector<8x256xf32>
    %140 = arith.addf %137, %139 : vector<8x256xf32>
    %141 = vector.extract_strided_slice %140 {offsets = [0, 0], sizes = [8, 192], strides = [1, 1]} : vector<8x256xf32> to vector<8x192xf32>
    %142 = arith.negf %141 : vector<8x192xf32>
    %143 = math.exp %142 : vector<8x192xf32>
    %cst_37 = arith.constant 1.000000e+00 : f32
    %144 = vector.broadcast %cst_37 : f32 to vector<8x192xf32>
    %145 = arith.addf %144, %143 : vector<8x192xf32>
    %146 = arith.divf %144, %145 : vector<8x192xf32>
    %147 = vector.extract_strided_slice %140 {offsets = [0, 192], sizes = [8, 64], strides = [1, 1]} : vector<8x256xf32> to vector<8x64xf32>
    %148 = math.tanh %147 : vector<8x64xf32>
    %149 = vector.extract_strided_slice %146 {offsets = [0, 0], sizes = [8, 64], strides = [1, 1]} : vector<8x192xf32> to vector<8x64xf32>
    %150 = vector.extract_strided_slice %146 {offsets = [0, 64], sizes = [8, 64], strides = [1, 1]} : vector<8x192xf32> to vector<8x64xf32>
    %151 = vector.extract_strided_slice %146 {offsets = [0, 128], sizes = [8, 64], strides = [1, 1]} : vector<8x192xf32> to vector<8x64xf32>
    %152 = arith.mulf %150, %130 : vector<8x64xf32>
    %153 = arith.mulf %149, %148 : vector<8x64xf32>
    %154 = arith.addf %152, %153 : vector<8x64xf32>
    %155 = math.tanh %154 : vector<8x64xf32>
    %156 = arith.mulf %151, %155 : vector<8x64xf32>
    %157 = arith.maximumf %133, %156 : vector<8x64xf32>
    %c6_i32 = arith.constant 6 : i32
    %c8_i32_38 = arith.constant 8 : i32
    %158 = arith.muli %c6_i32, %c8_i32_38 : i32
    %159 = tpu.assume_multiple %158, 8 : i32
    %160 = arith.index_cast %159 : i32 to index
    %c0_39 = arith.constant 0 : index
    %161 = vector.load %arg6[%160, %c0_39] : memref<64x256xf32, #tpu.memory_space<vmem>>, vector<8x256xf32>
    %162 = arith.truncf %156 : vector<8x64xf32> to vector<8x64xbf16>
    %cst_40 = arith.constant dense<0.000000e+00> : vector<8x256xf32>
    %163 = tpu.matmul %162, %11, %cst_40 {dimension_numbers = #tpu.dot_dimension_numbers<[1], [0], [0], [1], [0, 0, 1, 1], [], []>} : vector<8x64xbf16>, vector<64x256xbf16>, vector<8x256xf32> -> vector<8x256xf32>
    %164 = arith.addf %161, %163 : vector<8x256xf32>
    %165 = vector.extract_strided_slice %164 {offsets = [0, 0], sizes = [8, 192], strides = [1, 1]} : vector<8x256xf32> to vector<8x192xf32>
    %166 = arith.negf %165 : vector<8x192xf32>
    %167 = math.exp %166 : vector<8x192xf32>
    %cst_41 = arith.constant 1.000000e+00 : f32
    %168 = vector.broadcast %cst_41 : f32 to vector<8x192xf32>
    %169 = arith.addf %168, %167 : vector<8x192xf32>
    %170 = arith.divf %168, %169 : vector<8x192xf32>
    %171 = vector.extract_strided_slice %164 {offsets = [0, 192], sizes = [8, 64], strides = [1, 1]} : vector<8x256xf32> to vector<8x64xf32>
    %172 = math.tanh %171 : vector<8x64xf32>
    %173 = vector.extract_strided_slice %170 {offsets = [0, 0], sizes = [8, 64], strides = [1, 1]} : vector<8x192xf32> to vector<8x64xf32>
    %174 = vector.extract_strided_slice %170 {offsets = [0, 64], sizes = [8, 64], strides = [1, 1]} : vector<8x192xf32> to vector<8x64xf32>
    %175 = vector.extract_strided_slice %170 {offsets = [0, 128], sizes = [8, 64], strides = [1, 1]} : vector<8x192xf32> to vector<8x64xf32>
    %176 = arith.mulf %174, %154 : vector<8x64xf32>
    %177 = arith.mulf %173, %172 : vector<8x64xf32>
    %178 = arith.addf %176, %177 : vector<8x64xf32>
    %179 = math.tanh %178 : vector<8x64xf32>
    %180 = arith.mulf %175, %179 : vector<8x64xf32>
    %181 = arith.maximumf %157, %180 : vector<8x64xf32>
    %c7_i32 = arith.constant 7 : i32
    %c8_i32_42 = arith.constant 8 : i32
    %182 = arith.muli %c7_i32, %c8_i32_42 : i32
    %183 = tpu.assume_multiple %182, 8 : i32
    %184 = arith.index_cast %183 : i32 to index
    %c0_43 = arith.constant 0 : index
    %185 = vector.load %arg6[%184, %c0_43] : memref<64x256xf32, #tpu.memory_space<vmem>>, vector<8x256xf32>
    %186 = arith.truncf %180 : vector<8x64xf32> to vector<8x64xbf16>
    %cst_44 = arith.constant dense<0.000000e+00> : vector<8x256xf32>
    %187 = tpu.matmul %186, %11, %cst_44 {dimension_numbers = #tpu.dot_dimension_numbers<[1], [0], [0], [1], [0, 0, 1, 1], [], []>} : vector<8x64xbf16>, vector<64x256xbf16>, vector<8x256xf32> -> vector<8x256xf32>
    %188 = arith.addf %185, %187 : vector<8x256xf32>
    %189 = vector.extract_strided_slice %188 {offsets = [0, 0], sizes = [8, 192], strides = [1, 1]} : vector<8x256xf32> to vector<8x192xf32>
    %190 = arith.negf %189 : vector<8x192xf32>
    %191 = math.exp %190 : vector<8x192xf32>
    %cst_45 = arith.constant 1.000000e+00 : f32
    %192 = vector.broadcast %cst_45 : f32 to vector<8x192xf32>
    %193 = arith.addf %192, %191 : vector<8x192xf32>
    %194 = arith.divf %192, %193 : vector<8x192xf32>
    %195 = vector.extract_strided_slice %188 {offsets = [0, 192], sizes = [8, 64], strides = [1, 1]} : vector<8x256xf32> to vector<8x64xf32>
    %196 = math.tanh %195 : vector<8x64xf32>
    %197 = vector.extract_strided_slice %194 {offsets = [0, 0], sizes = [8, 64], strides = [1, 1]} : vector<8x192xf32> to vector<8x64xf32>
    %198 = vector.extract_strided_slice %194 {offsets = [0, 64], sizes = [8, 64], strides = [1, 1]} : vector<8x192xf32> to vector<8x64xf32>
    %199 = vector.extract_strided_slice %194 {offsets = [0, 128], sizes = [8, 64], strides = [1, 1]} : vector<8x192xf32> to vector<8x64xf32>
    %200 = arith.mulf %198, %178 : vector<8x64xf32>
    %201 = arith.mulf %197, %196 : vector<8x64xf32>
    %202 = arith.addf %200, %201 : vector<8x64xf32>
    %203 = math.tanh %202 : vector<8x64xf32>
    %204 = arith.mulf %199, %203 : vector<8x64xf32>
    %205 = arith.maximumf %181, %204 : vector<8x64xf32>
    %c8_i32_46 = arith.constant 8 : i32
    %206 = math.tanh %205 : vector<8x64xf32>
    %c0_47 = arith.constant 0 : index
    %c0_48 = arith.constant 0 : index
    %c0_49 = arith.constant 0 : index
    %207 = vector.load %arg5[%c0_47, %c0_48, %c0_49] : memref<1x8x64xf32, #tpu.memory_space<vmem>>, vector<1x8x64xf32>
    %208 = vector.shape_cast %207 : vector<1x8x64xf32> to vector<8x64xf32>
    %209 = vector.shape_cast %206 : vector<8x64xf32> to vector<1x8x64xf32>
    tpu.vector_store %arg5[%c0_47, %c0_48, %c0_49], %209 {strides = array<i32>} : memref<1x8x64xf32, #tpu.memory_space<vmem>>, vector<1x8x64xf32>,
    return
  }
  func.func @transform_0(%arg0: i32) -> (i32, i32, i32) {
    %c0_i32 = arith.constant 0 : i32
    %c0_i32_0 = arith.constant 0 : i32
    %c0_i32_1 = arith.constant 0 : i32
    return %arg0, %c0_i32, %c0_i32_0 : i32, i32, i32
  }
  func.func @transform_1(%arg0: i32) -> (i32, i32, i32) {
    %c3_i32 = arith.constant 3 : i32
    %0 = arith.minsi %arg0, %c3_i32 : i32
    %c0_i32 = arith.constant 0 : i32
    %c0_i32_0 = arith.constant 0 : i32
    %c0_i32_1 = arith.constant 0 : i32
    return %0, %c0_i32, %c0_i32_0 : i32, i32, i32
  }
  func.func @transform_2(%arg0: i32) -> (i32, i32, i32) {
    %c3_i32 = arith.constant 3 : i32
    %0 = arith.minsi %arg0, %c3_i32 : i32
    %c0_i32 = arith.constant 0 : i32
    %c0_i32_0 = arith.constant 0 : i32
    %c0_i32_1 = arith.constant 0 : i32
    return %0, %c0_i32, %c0_i32_0 : i32, i32, i32
  }
  func.func @transform_3(%arg0: i32) -> (i32, i32, i32) {
    %c3_i32 = arith.constant 3 : i32
    %0 = arith.minsi %arg0, %c3_i32 : i32
    %c0_i32 = arith.constant 0 : i32
    %c0_i32_0 = arith.constant 0 : i32
    %c0_i32_1 = arith.constant 0 : i32
    return %0, %c0_i32, %c0_i32_0 : i32, i32, i32
  }
  func.func @transform_4(%arg0: i32) -> (i32, i32, i32) {
    %c0_i32 = arith.constant 0 : i32
    %c0_i32_0 = arith.constant 0 : i32
    %c0_i32_1 = arith.constant 0 : i32
    return %arg0, %c0_i32, %c0_i32_0 : i32, i32, i32
  }
}

module attributes {stable_mosaic.version = 11 : i64} {
  func.func @fuse_loss_kernel(%arg0: memref<2x192xbf16, #tpu.memory_space<vmem>>, %arg1: memref<2x2x64xf32, #tpu.memory_space<vmem>>, %arg2: memref<192x64xbf16, #tpu.memory_space<vmem>>, %arg3: memref<1x64xf32, #tpu.memory_space<vmem>>, %arg4: memref<1x1xf32, #tpu.memory_space<vmem>>) attributes {dimension_semantics = [], scalar_prefetch = 0 : i64, scratch_operands = 0 : i64, tpu.core_type = #tpu.core_type<tc>} {
    %c0 = arith.constant 0 : index
    %c0_0 = arith.constant 0 : index
    %0 = vector.load %arg0[%c0, %c0_0] : memref<2x192xbf16, #tpu.memory_space<vmem>>, vector<2x192xbf16>
    %c0_1 = arith.constant 0 : index
    %c0_2 = arith.constant 0 : index
    %1 = vector.load %arg2[%c0_1, %c0_2] : memref<192x64xbf16, #tpu.memory_space<vmem>>, vector<192x64xbf16>
    %cst = arith.constant dense<0.000000e+00> : vector<2x64xf32>
    %2 = tpu.matmul %0, %1, %cst {dimension_numbers = #tpu.dot_dimension_numbers<[1], [0], [0], [1], [0, 0, 1, 1], [], []>} : vector<2x192xbf16>, vector<192x64xbf16>, vector<2x64xf32> -> vector<2x64xf32>
    %c0_3 = arith.constant 0 : index
    %c0_4 = arith.constant 0 : index
    %3 = vector.load %arg3[%c0_3, %c0_4] : memref<1x64xf32, #tpu.memory_space<vmem>>, vector<1x64xf32>
    %4 = vector.broadcast %3 : vector<1x64xf32> to vector<2x64xf32>
    %5 = arith.addf %2, %4 : vector<2x64xf32>
    %6 = math.tanh %5 : vector<2x64xf32>
    %c0_5 = arith.constant 0 : index
    %c0_6 = arith.constant 0 : index
    %c0_7 = arith.constant 0 : index
    %7 = vector.load %arg1[%c0_5, %c0_6, %c0_7] : memref<2x2x64xf32, #tpu.memory_space<vmem>>, vector<1x2x64xf32>
    %8 = vector.shape_cast %7 : vector<1x2x64xf32> to vector<2x64xf32>
    %c1 = arith.constant 1 : index
    %c0_8 = arith.constant 0 : index
    %c0_9 = arith.constant 0 : index
    %9 = vector.load %arg1[%c1, %c0_8, %c0_9] : memref<2x2x64xf32, #tpu.memory_space<vmem>>, vector<1x2x64xf32>
    %10 = vector.shape_cast %9 : vector<1x2x64xf32> to vector<2x64xf32>
    %11 = arith.mulf %6, %6 : vector<2x64xf32>
    %cst_10 = arith.constant dense<0.000000e+00> : vector<2xf32>
    %12 = vector.multi_reduction <add>, %11, %cst_10 [1] : vector<2x64xf32> to vector<2xf32>
    %13 = vector.shape_cast %12 : vector<2xf32> to vector<2x1xf32>
    %14 = math.sqrt %13 : vector<2x1xf32>
    %cst_11 = arith.constant 9.99999993E-9 : f32
    %15 = vector.broadcast %cst_11 : f32 to vector<2x1xf32>
    %16 = arith.maximumf %14, %15 : vector<2x1xf32>
    %17 = arith.mulf %8, %8 : vector<2x64xf32>
    %cst_12 = arith.constant dense<0.000000e+00> : vector<2xf32>
    %18 = vector.multi_reduction <add>, %17, %cst_12 [1] : vector<2x64xf32> to vector<2xf32>
    %19 = vector.shape_cast %18 : vector<2xf32> to vector<2x1xf32>
    %20 = math.sqrt %19 : vector<2x1xf32>
    %cst_13 = arith.constant 9.99999993E-9 : f32
    %21 = vector.broadcast %cst_13 : f32 to vector<2x1xf32>
    %22 = arith.maximumf %20, %21 : vector<2x1xf32>
    %23 = arith.mulf %10, %10 : vector<2x64xf32>
    %cst_14 = arith.constant dense<0.000000e+00> : vector<2xf32>
    %24 = vector.multi_reduction <add>, %23, %cst_14 [1] : vector<2x64xf32> to vector<2xf32>
    %25 = vector.shape_cast %24 : vector<2xf32> to vector<2x1xf32>
    %26 = math.sqrt %25 : vector<2x1xf32>
    %cst_15 = arith.constant 9.99999993E-9 : f32
    %27 = vector.broadcast %cst_15 : f32 to vector<2x1xf32>
    %28 = arith.maximumf %26, %27 : vector<2x1xf32>
    %29 = arith.mulf %6, %8 : vector<2x64xf32>
    %cst_16 = arith.constant dense<0.000000e+00> : vector<2xf32>
    %30 = vector.multi_reduction <add>, %29, %cst_16 [1] : vector<2x64xf32> to vector<2xf32>
    %31 = vector.shape_cast %30 : vector<2xf32> to vector<2x1xf32>
    %32 = arith.mulf %16, %22 : vector<2x1xf32>
    %33 = arith.divf %31, %32 : vector<2x1xf32>
    %34 = arith.mulf %6, %10 : vector<2x64xf32>
    %cst_17 = arith.constant dense<0.000000e+00> : vector<2xf32>
    %35 = vector.multi_reduction <add>, %34, %cst_17 [1] : vector<2x64xf32> to vector<2xf32>
    %36 = vector.shape_cast %35 : vector<2xf32> to vector<2x1xf32>
    %37 = arith.mulf %16, %28 : vector<2x1xf32>
    %38 = arith.divf %36, %37 : vector<2x1xf32>
    %cst_18 = arith.constant 5.000000e-02 : f32
    %39 = vector.broadcast %cst_18 : f32 to vector<2x1xf32>
    %40 = arith.subf %39, %33 : vector<2x1xf32>
    %41 = arith.addf %40, %38 : vector<2x1xf32>
    %cst_19 = arith.constant 9.99999997E-7 : f32
    %42 = vector.broadcast %cst_19 : f32 to vector<2x1xf32>
    %43 = arith.maximumf %41, %42 : vector<2x1xf32>
    %cst_20 = arith.constant dense<0.000000e+00> : vector<1xf32>
    %44 = vector.multi_reduction <add>, %43, %cst_20 [0] : vector<2x1xf32> to vector<1xf32>
    %45 = vector.shape_cast %44 : vector<1xf32> to vector<1x1xf32>
    %cst_21 = arith.constant 2.000000e+00 : f32
    %46 = vector.broadcast %cst_21 : f32 to vector<1x1xf32>
    %47 = arith.divf %45, %46 : vector<1x1xf32>
    %c0_22 = arith.constant 0 : index
    %c0_23 = arith.constant 0 : index
    %48 = vector.load %arg4[%c0_22, %c0_23] : memref<1x1xf32, #tpu.memory_space<vmem>>, vector<1x1xf32>
    tpu.vector_store %arg4[%c0_22, %c0_23], %47 {strides = array<i32>} : memref<1x1xf32, #tpu.memory_space<vmem>>, vector<1x1xf32>,
    return
  }
}

</mosaic_0001>

<bundles_post_ra>
// kernel: joint_embedding_forward.3
= control target key start
LH: loop header
LB: loop body
LE: loop exit
PB: predicated region body
PF: predicated region fallthrough
CT: control target
= control target key end

     0   :  { %v342_v1 = vmov 0   ;;  %v63_v4 = vlaneseq  ;;  %v343_v7 = vmov 1966171168   ;;  %s435_s0 = inlined_call_operand.vmem [shape: bf16[2,192], index: 0, kind: input, shape index: {}]   ;;  %s436_s1 = inlined_call_operand.vmem [shape: f32[2,2,64], index: 1, kind: input, shape index: {}]   ;;  %s437_s2 = inlined_call_operand.vmem [shape: bf16[192,64], index: 2, kind: input, shape index: {}]   ;;  %s438_s3 = inlined_call_operand.vmem [shape: f32[1,64], index: 3, kind: input, shape index: {}]   ;;  %s439_s4 = inlined_call_operand.hbm [shape: f32[1,1], index: 4, kind: output, shape index: {}]  }
   0x1   :  { %v294_v0 = vld [vmem:[%s437_s2] sm:$0xff]   ;;  %151 = vmatprep.subr.bf16.mxu0 %v342_v1  ;;  %v295_v2 = vld [vmem:[%s437_s2 + $0x8] sm:$0xff]   ;;  %v296_v3 = vld [vmem:[%s437_s2 + $0x10] sm:$0xff]   ;;  %v61_v8 = vunpack.c.l.s4 %v343_v7 }
   0x2   :  { %152 = vmatpush1.bf16.msra.mxu0 %v294_v0  ;;  %v297_v5 = vld [vmem:[%s437_s2 + $0x18] sm:$0xff]   ;;  %v276_v6 = vld.sshfl [vmem:[%s435_s0] sm:$0x11 pattern:$0x75316420]  ;;  %v64_v9 = vshrl.u32 %v63_v4, 7 }
   0x3   :  { %153 = vmatprep.subr.bf16.mxu0 %v342_v1 }
   0x6   :  { %154 = vmatpush1.bf16.msra.mxu0 %v295_v2 }
   0x7   :  { %155 = vmatprep.subr.bf16.mxu0 %v342_v1 }
   0xa   :  { %156 = vmatpush1.bf16.msra.mxu0 %v296_v3 }
   0xb   :  { %157 = vmatprep.subr.bf16.mxu0 %v342_v1 }
   0xc   :  { %9 = vsyncpa [#allocation3], 0  ;;  %v298_v10 = vld [vmem:[%s437_s2 + $0x20] sm:$0xff]   ;;  %v59_v11 = vcombine.high %v276_v6, %v276_v6  ;;  %v62_v12 = vunpack.c.0.s8 %v61_v8  ;;  %v299_v14 = vld [vmem:[%s437_s2 + $0x28] sm:$0xff]   ;;  %vm147_vm0 = vcmask 523264   ;;  %vm196_vm1 = vcmask 517120  }
   0xd   :  { %v300_v16 = vld [vmem:[%s437_s2 + $0x30] sm:$0xff]   ;;  %v301_v17 = vld [vmem:[%s437_s2 + $0x38] sm:$0xff]   ;;  %v302_v18 = vld [vmem:[%s437_s2 + $0x40] sm:$0xff]   ;;  %vm249_vm8 = vcmask 1041408   ;;  %vm259_vm9 = vcmask 0  }
   0xe   :  { %158 = vmatpush1.bf16.msra.mxu0 %v297_v5  ;;  %v65_v13 = vsub.s32 %v62_v12, %v64_v9  ;;  %v303_v19 = vld [vmem:[%s437_s2 + $0x48] sm:$0xff]   ;;  %v304_v20 = vld [vmem:[%s437_s2 + $0x50] sm:$0xff]   ;;  %v305_v21 = vld [vmem:[%s437_s2 + $0x58] sm:$0xff]  }
   0xf   :  { %159 = vmatprep.subr.bf16.mxu0 %v342_v1  ;;  %v290_v23 = vld [vmem:[%s436_s1 + $0x2] sm:$0x3]  ;;  %v275_v26 = vld [vmem:[%s438_s3] ss:$0 sm:$0xff] }
  0x10   :  { %v73_v15 = vrot.slane %v59_v11, %v65_v13  ;;  %v66_v22 = vrot.slane %v276_v6, %v65_v13  ;;  %v220_v24 = vmul.f32 %v290_v23, %v290_v23  ;;  %v192_v32 = vld [vmem:[%s436_s1] sm:$0x3]  ;;  %s344_s1 = smov [#allocation2]  }
  0x11   :  { %v208_v36 = vmul.f32 %v192_v32, %v192_v32  ;;  %s267_s3 = sshll.u32 %s344_s1, 4  ;;  %s268_s3 = int_to_ptr.vmem [resolvable:$true] %s267_s3 }
  0x12   :  { %160 = vmatpush1.bf16.msra.mxu0 %v298_v10  ;;  %289 = vmatprep.mubr.msk.bf16.mxu0 %vm147_vm0, %v73_v15  ;;  %v221_v25 = vsel %vm196_vm1, %v220_v24, 0.0  ;;  %s318_s19 = scalar_lea.vmem %s268_s3, 16  ;;  %s322_s20 = scalar_lea.vmem %s268_s3, 32 }
  0x13   :  { %161 = vmatprep.subr.bf16.mxu0 %v342_v1  ;;  %222 = vadd.xlane.f32.xlu1 %v221_v25  ;;  %v209_v39 = vsel %vm196_vm1, %v208_v36, 0.0  ;;  %p319_p0 = scmp.ne.s32.totalorder %s268_s3, %s318_s19  ;;  %p323_p1 = scmp.lt.s32.totalorder %s268_s3, %s268_s3 }
  0x14   :  { %p324_p2 = scmp.lt.s32.totalorder %s322_s20, %s318_s19 }
  0x16   :  { %162 = vmatpush1.bf16.msra.mxu0 %v299_v14  ;;  %p325_p3 = por %p324_p2, %p323_p1 }
  0x17   :  { %163 = vmatprep.subr.bf16.mxu0 %v342_v1 }
  0x18   :  { %p326_p4 = pnand %p325_p3, %p319_p0 }
  0x1a   :  { %164 = vmatpush1.bf16.msra.mxu0 %v300_v16 }
  0x1b   :  { %165 = vmatprep.subr.bf16.mxu0 %v342_v1 }
  0x1e   :  { %166 = vmatpush1.bf16.msra.mxu0 %v301_v17 }
  0x1f   :  { %167 = vmatprep.subr.bf16.mxu0 %v342_v1 }
  0x22   :  { %168 = vmatpush1.bf16.msra.mxu0 %v302_v18 }
  0x23   :  { %169 = vmatprep.subr.bf16.mxu0 %v342_v1 }
  0x26   :  { %170 = vmatpush1.bf16.msra.mxu0 %v303_v19 }
  0x27   :  { %171 = vmatprep.subr.bf16.mxu0 %v342_v1 }
  0x2a   :  { %172 = vmatpush1.bf16.msra.mxu0 %v304_v20 }
  0x2b   :  { %173 = vmatprep.subr.bf16.mxu0 %v342_v1 }
  0x2e   :  { %174 = vmatpush1.bf16.msra.mxu0 %v305_v21 }
  0x31   :  { %184 = vmatmul.mubr.bf16.vlgmr.msra.gmra.mrb[0].mxu0 %v66_v22 }
  0xa0   :  { %v223_v42 = vpop.xlane.xlu1 %222 }
  0xa1   :  { %vm226_vm2 = vcmp.eq.f32.partialorder %v223_v42, inf  ;;  %v229_v47 = vand.u32 2147483648, %v223_v42  ;;  %vm228_vm3 = vcmp.eq.f32.partialorder %v223_v42, 0.0 }
 0x104   :  { %v185_v27 = vpop.f32.mrb[0].mxu0 }
 0x105   :  { %v186_v28 = vadd.f32 %v275_v26, %v185_v27  ;;  %v187_v29 = vpop.f32.mrb[1].mxu0 }
 0x106   :  { %v188_v30 = vpop.f32.mrb[2].mxu0 }
 0x107   :  { %306 = vtanh.f32 %v186_v28  ;;  %v189_v31 = vpop.f32.mrb[3].mxu0 }
 0x108   :  { %308 = vrsqrt.f32 %v223_v42 }
 0x111   :  { %v307_v33 = vpop.eup %306 }
 0x112   :  { %v232_v34 = vmul.f32 %v307_v33, %v192_v32  ;;  %v195_v35 = vmul.f32 %v307_v33, %v307_v33  ;;  %v239_v40 = vmul.f32 %v307_v33, %v290_v23  ;;  %v309_v44 = vpop.eup %308 }
 0x113   :  { %v225_v46 = vmul.f32 %v309_v44, %v223_v42 }
 0x114   :  { %v233_v37 = vsel %vm196_vm1, %v232_v34, 0.0  ;;  %v197_v38 = vsel %vm196_vm1, %v195_v35, 0.0  ;;  %v240_v41 = vsel %vm196_vm1, %v239_v40, 0.0 }
 0x115   :  { %234 = vadd.xlane.f32.xlu1 %v233_v37  ;;  %198 = vadd.xlane.f32.xlu0 %v197_v38  ;;  %v227_v49 = vsel %vm226_vm2, %v223_v42, %v225_v46 }
 0x116   :  { %v230_v52 = vsel %vm228_vm3, %v229_v47, %v227_v49 }
 0x117   :  { %v231_v59 = vmax.f32 %v230_v52, 1e-08 }
 0x119   :  { %210 = vadd.xlane.f32.xlu0 %v209_v39 }
 0x11d   :  { %241 = vadd.xlane.f32.xlu0 %v240_v41 }
 0x1a2   :  { %v199_v43 = vpop.xlane.xlu0 %198  ;;  %v235_v3 = vpop.xlane.xlu1 %234 }
 0x1a3   :  { %310 = vrsqrt.f32 %v199_v43  ;;  %vm202_vm4 = vcmp.eq.f32.partialorder %v199_v43, inf  ;;  %v205_v51 = vand.u32 2147483648, %v199_v43  ;;  %vm204_vm5 = vcmp.eq.f32.partialorder %v199_v43, 0.0 }
 0x1a6   :  { %v211_v45 = vpop.xlane.xlu0 %210 }
 0x1a7   :  { %312 = vrsqrt.f32 %v211_v45  ;;  %vm214_vm6 = vcmp.eq.f32.partialorder %v211_v45, inf  ;;  %v217_v58 = vand.u32 2147483648, %v211_v45  ;;  %vm216_vm7 = vcmp.eq.f32.partialorder %v211_v45, 0.0 }
 0x1aa   :  { %v242_v5 = vpop.xlane.xlu0 %241 }
 0x1ad   :  { %v311_v48 = vpop.eup %310 }
 0x1ae   :  { %v201_v50 = vmul.f32 %v311_v48, %v199_v43 }
 0x1b0   :  { %v203_v53 = vsel %vm202_vm4, %v199_v43, %v201_v50 }
 0x1b1   :  { %v313_v54 = vpop.eup %312  ;;  %v206_v55 = vsel %vm204_vm5, %v205_v51, %v203_v53 }
 0x1b2   :  { %v213_v56 = vmul.f32 %v313_v54, %v211_v45  ;;  %v207_v57 = vmax.f32 %v206_v55, 1e-08 }
 0x1b4   :  { %v215_v60 = vsel %vm214_vm6, %v211_v45, %v213_v56  ;;  %v243_v62 = vmul.f32 %v231_v59, %v207_v57 }
 0x1b5   :  { %v218_v61 = vsel %vm216_vm7, %v217_v58, %v215_v60 }
 0x1b6   :  { %v219_v63 = vmax.f32 %v218_v61, 1e-08  ;;  %314 = vrcp.f32 %v243_v62 }
 0x1b8   :  { %v236_v0 = vmul.f32 %v219_v63, %v207_v57 }
 0x1ba   :  { %316 = vrcp.f32 %v236_v0 }
 0x1c0   :  { %v315_v1 = vpop.eup %314 }
 0x1c1   :  { %v245_v7 = vmul.f32 %v315_v1, %v242_v5 }
 0x1c4   :  { %v317_v2 = vpop.eup %316 }
 0x1c5   :  { %v238_v4 = vmul.f32 %v317_v2, %v235_v3 }
 0x1c7   :  { %v246_v6 = vsub.f32 0.05, %v238_v4 }
 0x1c9   :  { %v247_v8 = vadd.f32 %v246_v6, %v245_v7 }
 0x1cb   :  { %v248_v9 = vmax.f32 %v247_v8, 1e-06 }
 0x1cd   :  { %v250_v10 = vsel %vm249_vm8, %v248_v9, 0.0 }
 0x1ce   :  { %v251_v11 = vrot.slane %v250_v10, 4 }
 0x1d0   :  { %v252_v12 = vadd.f32 %v251_v11, %v250_v10 }
 0x1d2   :  { %v253_v13 = vrot.slane %v252_v12, 2 }
 0x1d4   :  { %v254_v14 = vadd.f32 %v253_v13, %v252_v12 }
 0x1d6   :  { %v255_v15 = vrot.slane %v254_v14, 1 }
 0x1d8   :  { %v256_v16 = vadd.f32 %v255_v15, %v254_v14 }
 0x1da   :  { %v258_v17 = vmul.f32 0.5, %v256_v16 }
 0x1dc   :  { %260 = vst.msk [vmem:[#allocation2] sm:$0x1] %vm259_vm9, %v258_v17 }
 0x1dd   :  { %329 = shalt.err (!%p326_p4)
}
 0x1de   :  { %s330_s23 = scalar_lea.hbm %s439_s4, 16 }
 0x1df   :  { %p331_p5 = scmp.ne.s32.totalorder %s439_s4, %s330_s23  ;;  %p334_p6 = scmp.lt.u32.totalorder %s330_s23, %s439_s4 }
 0x1e1   :  { %p336_p7 = pnand %p334_p6, %p331_p5 }
 0x1e3   :  { %339 = shalt.err (!%p336_p7)
}
 0x1e4   :  { %270 = dma.vmem_to_hbm [thread:$0]  %s268_s3, 16, %s439_s4, [#allocation3]  }
 0x1e5   :  { %340 = dma.done.wait [#allocation3], 16  }
 0x1e6   :  { %341 = vsyncadd [#allocation3], 4294967280 }
 0x1e7   :  { %274 = vsyncpa [#allocation3], 1 }

// kernel: joint_embedding_forward.2
= control target key start
LH: loop header
LB: loop body
LE: loop exit
PB: predicated region body
PF: predicated region fallthrough
CT: control target
= control target key end

     0   :  { %s1539_s15 = smov 0   ;;  %s1790_s0 = inlined_call_operand.vmem [shape: bf16[5,64,64], index: 0, kind: input, shape index: {}]   ;;  %s1791_s1 = inlined_call_operand.vmem [shape: bf16[4,64,256], index: 1, kind: input, shape index: {}]   ;;  %s1792_s2 = inlined_call_operand.vmem [shape: bf16[4,64,256], index: 2, kind: input, shape index: {}]   ;;  %s1793_s3 = inlined_call_operand.vmem [shape: f32[4,1,256], index: 3, kind: input, shape index: {}]   ;;  %s1794_s4 = inlined_call_operand.vmem [shape: f32[5,8,64], index: 4, kind: output, shape index: {}]  }
   0x1 LB: > { %s1294_s16 = sadd.s32 4294967295, %s1510_s15   ;;  %p1298_p0 = scmp.ge.s32.totalorder %s1510_s15, 1  ;;  %s1510_s15 = sphi %s1539_s15, %s14_s15  }
   0x2   : > { %p215_p1 = scmp.lt.s32.totalorder %s1510_s15, 6 }
   0x4   : > { %p216_p2 = pnand %p1298_p0, %p215_p1 }
   0x5   : > { %p265_p3 = scmp.lt.s32.totalorder (!%p216_p2), %s1294_s16, 3  ;;  %v314_v0 = vlaneseq (!%p216_p2)  ;;  %v1512_v1 = vmov (!%p216_p2), 0   ;;  %p260_p4 = scmp.lt.s32.totalorder (!%p216_p2), %s1294_s16, 4  ;;  %vm384_vm0 = vcmask (!%p216_p2), 523264  }
   0x6   : > { %219 = sbr.rel (%p216_p2) target bundleno = 4769 (0x12a1), region = 36  ;;  %429 = vmatprep.mubr.bf16.mxu0 (!%p216_p2), %v1512_v1  ;;  %574 = vmatprep.mubr.bf16.mxu1 (!%p216_p2), %v1512_v1  ;;  %s1513_s7 = smov (!%p216_p2), 64  }
   0x7   : > { %v1549_v2 = vshrl.u32 (!%p216_p2), %v314_v0, 7 }
   0x9   : > { %v316_v3 = vsub.s32 (!%p216_p2), 0, %v1549_v2  ;;  %v320_v23 = vsub.s32 (!%p216_p2), 1, %v1549_v2 }
   0xd   : > { %s266_s17 = scalar_select %p265_p3, %s1294_s16, 3 }
   0xe   : > { %s1798_s16 = smov (!%p260_p4, %s1294_s16), 4 }
   0xf   : > { %s1796_s17 = smov (!%p265_p3, %s266_s17), 3  ;;  %s1365_s29 = sshll.u32 %s1798_s16, 5 }
  0x10   : > { %s1366_s18 = sshll.u32 %s1796_s17, 6  ;;  %s1314_s19 = sshll.u32 %s1796_s17, 1 }
  0x11   : > { %s1555_s22 = scalar_lea.vmem %s1791_s1, %s1366_s18  ;;  %s1560_s25 = scalar_lea.vmem %s1792_s2, %s1366_s18 }
  0x12   : > { %s288_s28 = scalar_lea.vmem %s1793_s3, %s1314_s19  ;;  %v1378_v4 = vld [vmem:[%s1555_s22 + $0x4] ss:$8 sps:$4 sm:$0xff]   ;;  %v1382_v8 = vld [vmem:[%s1555_s22] ss:$8 sps:$4 sm:$0xff]   ;;  %v1384_v10 = vld [vmem:[%s1555_s22 + $0x14] ss:$8 sps:$4 sm:$0xff]   ;;  %s1608_s6 = scalar_lea.vmem %s1790_s0, %s1365_s29 }
  0x13   : > { %v312_v5 = vld [vmem:[%s288_s28] sm:$0x3]  ;;  %397 = vmatprep.subr.bf16.mxu0 %v1378_v4  ;;  %v1569_v7 = vld [vmem:[%s1560_s25 + $0x4] ss:$8 sps:$4 sm:$0xff]   ;;  %v1581_v11 = vld [vmem:[%s1560_s25 + $0x14] ss:$8 sps:$4 sm:$0xff]  }
  0x14   : > { %v1566_v6 = vrot.slane %v312_v5, %v316_v3  ;;  %v1573_v9 = vld [vmem:[%s1560_s25] ss:$8 sps:$4 sm:$0xff]   ;;  %542 = vmatprep.subr.bf16.mxu1 %v1569_v7  ;;  %398 = vmatpush1.bf16.msra.mxu0 %v1382_v8  ;;  %v1388_v12 = vld [vmem:[%s1555_s22 + $0x10] ss:$8 sps:$4 sm:$0xff]   ;;  %v1390_v14 = vld [vmem:[%s1555_s22 + $0x24] ss:$8 sps:$4 sm:$0xff]   ;;  %v1640_v24 = vrot.slane %v312_v5, %v320_v23 }
  0x15   : > { %543 = vmatpush1.bf16.msra.mxu1 %v1573_v9  ;;  %399 = vmatprep.subr.bf16.mxu0 %v1384_v10  ;;  %v1586_v13 = vld [vmem:[%s1560_s25 + $0x10] ss:$8 sps:$4 sm:$0xff]   ;;  %v1591_v15 = vld [vmem:[%s1560_s25 + $0x24] ss:$8 sps:$4 sm:$0xff]   ;;  %v1394_v16 = vld [vmem:[%s1555_s22 + $0x20] ss:$8 sps:$4 sm:$0xff]  }
  0x16   : > { %544 = vmatprep.subr.bf16.mxu1 %v1581_v11  ;;  %v1596_v17 = vld [vmem:[%s1560_s25 + $0x20] ss:$8 sps:$4 sm:$0xff]   ;;  %v1396_v18 = vld [vmem:[%s1555_s22 + $0x34] ss:$8 sps:$4 sm:$0xff]   ;;  %v1400_v20 = vld [vmem:[%s1555_s22 + $0x30] ss:$8 sps:$4 sm:$0xff]  }
  0x17   : > { %v1602_v19 = vld [vmem:[%s1560_s25 + $0x34] ss:$8 sps:$4 sm:$0xff]   ;;  %v1611_v21 = vld [vmem:[%s1560_s25 + $0x30] ss:$8 sps:$4 sm:$0xff]   ;;  %v1402_v22 = vld [vmem:[%s1608_s6] sm:$0xff]   ;;  %s1315_s8 = sshll.u32 %s1798_s16, 3 }
  0x18   : > { %400 = vmatpush1.bf16.msra.mxu0 %v1388_v12  ;;  %v1403_v10 = vld [vmem:[%s1608_s6 + $0x8] sm:$0xff]   ;;  %v1404_v12 = vld [vmem:[%s1608_s6 + $0x10] sm:$0xff]   ;;  %s294_s11 = scalar_lea.vmem %s1794_s4, %s1315_s8 }
  0x19   : > { %545 = vmatpush1.bf16.msra.mxu1 %v1586_v13  ;;  %401 = vmatprep.subr.bf16.mxu0 %v1390_v14  ;;  %v1405_v14 = vld [vmem:[%s1608_s6 + $0x18] sm:$0xff]  }
  0x1a   : > { %546 = vmatprep.subr.bf16.mxu1 %v1591_v15 }
  0x1c   : > { %402 = vmatpush1.bf16.msra.mxu0 %v1394_v16 }
  0x1d   : > { %547 = vmatpush1.bf16.msra.mxu1 %v1596_v17  ;;  %403 = vmatprep.subr.bf16.mxu0 %v1396_v18 }
  0x1e   : > { %548 = vmatprep.subr.bf16.mxu1 %v1602_v19 }
  0x20   : > { %404 = vmatpush1.bf16.msra.mxu0 %v1400_v20 }
  0x21   : > { %549 = vmatpush1.bf16.msra.mxu1 %v1611_v21  ;;  %707 = vmatprep.subr.bf16.mxu0 %v1569_v7 }
  0x22   : > { %624 = vmatprep.subr.bf16.mxu1 %v1569_v7 }
  0x23   : > { %1328 = vmatmul.mubr.msk.bf16.vlgmr.msra.gmra.mrb[0].mxu0 %vm384_vm0, %v1402_v22 }
  0x24   : > { %575 = vmatmul.mubr.bf16.vlgmr.msra.gmra.mrb[0].mxu1 %v1512_v1  ;;  %708 = vmatpush1.bf16.msra.mxu0 %v1573_v9 }
  0x25   : > { %625 = vmatpush1.bf16.msra.mxu1 %v1573_v9  ;;  %656 = vmatprep.mubr.bf16.mxu1 %v1512_v1 }
  0x26   : > { %626 = vmatprep.subr.bf16.mxu1 %v1581_v11  ;;  %439 = vmatprep.mubr.bf16.mxu0 %v1512_v1 }
  0x27   : > { %709 = vmatprep.subr.bf16.mxu0 %v1581_v11 }
  0x28   : > { %710 = vmatpush1.bf16.msra.mxu0 %v1586_v13 }
  0x29   : > { %627 = vmatpush1.bf16.msra.mxu1 %v1586_v13  ;;  %711 = vmatprep.subr.bf16.mxu0 %v1591_v15 }
  0x2a   : > { %628 = vmatprep.subr.bf16.mxu1 %v1591_v15 }
  0x2b   : > { %1329 = vmatmul.mubr.msk.bf16.gmra.mrb[4].mxu0 %vm384_vm0, %v1403_v10 }
  0x2c   : > { %712 = vmatpush1.bf16.msra.mxu0 %v1596_v17  ;;  %449 = vmatprep.mubr.bf16.mxu0 %v1512_v1 }
  0x2d   : > { %629 = vmatpush1.bf16.msra.mxu1 %v1596_v17  ;;  %713 = vmatprep.subr.bf16.mxu0 %v1602_v19 }
  0x2e   : > { %630 = vmatprep.subr.bf16.mxu1 %v1602_v19 }
  0x30   : > { %714 = vmatpush1.bf16.msra.mxu0 %v1611_v21 }
  0x31   : > { %631 = vmatpush1.bf16.msra.mxu1 %v1611_v21  ;;  %873 = vmatprep.subr.bf16.mxu0 %v1569_v7 }
  0x32   : > { %790 = vmatprep.subr.bf16.mxu1 %v1569_v7 }
  0x33   : > { %1330 = vmatmul.mubr.msk.bf16.gmra.mrb[8].mxu0 %vm384_vm0, %v1404_v12 }
  0x34   : > { %459 = vmatprep.mubr.bf16.mxu0 %v1512_v1 }
  0x3b   : > { %1331 = vmatmul.mubr.msk.bf16.gmra.mrb[12].mxu0 %vm384_vm0, %v1405_v14 }
  0x3c   : > { %739 = vmatprep.mubr.bf16.mxu0 %v1512_v1 }
  0xf6   : > { %v431_v25 = vpop.f32.mrb[0].mxu0 }
  0xf7   : > { %v432_v26 = vadd.f32 %v431_v25, %v1566_v6  ;;  %v576_v27 = vpop.f32.mrb[0].mxu1  ;;  %v433_v28 = vpop.f32.mrb[1].mxu0 }
  0xf8   : > { %v434_v29 = vadd.f32 %v433_v28, %v1640_v24  ;;  %v578_v30 = vpop.f32.mrb[1].mxu1  ;;  %v435_v31 = vpop.f32.mrb[2].mxu0 }
  0xf9   : > { %v583_v32 = vadd.f32 %v576_v27, %v432_v26  ;;  %v580_v33 = vpop.f32.mrb[2].mxu1  ;;  %v437_v34 = vpop.f32.mrb[3].mxu0  ;;  %v436_v55 = vadd.f32 %v435_v31, %v1566_v6 }
  0xfa   : > { %v584_v35 = vadd.f32 %v578_v30, %v434_v29  ;;  %v581_v36 = vpop.f32.mrb[3].mxu1  ;;  %v438_v56 = vadd.f32 %v437_v34, %v1640_v24 }
  0xfb   : > { %v1340_v38 = vmul.f32 -1.442695, %v583_v32 }
  0xfc   : > { %1406 = vtanh.f32 %v584_v35  ;;  %v1341_v48 = vmul.f32 -1.442695, %v584_v35 }
  0xfd   : > { %1408 = vpow2.f32 %v1340_v38 }
  0xfe   : > { %v441_v25 = vpop.f32.mrb[4].mxu0 }
  0xff   : > { %v443_v26 = vpop.f32.mrb[5].mxu0 }
 0x100   : > { %v1675_v27 = vpop.f32.mrb[6].mxu0 }
 0x101   : > { %v1677_v28 = vpop.f32.mrb[7].mxu0 }
 0x102   : > { %v448_v14 = vadd.f32 %v1677_v28, %v1640_v24 }
 0x106   : > { %v1407_v37 = vpop.eup %1406  ;;  %v1679_v29 = vpop.f32.mrb[8].mxu0 }
 0x107   : > { %600 = vrot.lane.b32.xlu0 %v1407_v37, %s1513_s7  ;;  %v1409_v39 = vpop.eup %1408  ;;  %v1681_v30 = vpop.f32.mrb[9].mxu0 }
 0x108   : > { %v591_v40 = vadd.f32 1.0, %v1409_v39  ;;  %v1683_v31 = vpop.f32.mrb[10].mxu0 }
 0x109   : > { %v1685_v32 = vpop.f32.mrb[11].mxu0 }
 0x10a   : > { %1410 = vrcp.f32 %v591_v40 }
 0x10e   : > { %v1687_v35 = vpop.f32.mrb[12].mxu0 }
 0x10f   : > { %v1689_v36 = vpop.f32.mrb[13].mxu0 }
 0x110   : > { %v1691_v37 = vpop.f32.mrb[14].mxu0 }
 0x111   : > { %v1693_v38 = vpop.f32.mrb[15].mxu0 }
 0x114   : > { %v1411_v41 = vpop.eup %1410 }
 0x115   : > { %v598_v44 = vmul.f32 0.0, %v1411_v41 }
 0x179   : > { %v601_v42 = vpop.permute.xlu0 %600 }
 0x17a   : > { %v603_v43 = vmul.f32 %v1411_v41, %v601_v42 }
 0x17c   : > { %605 = vrot.lane.b32.xlu0 %v603_v43, %s1513_s7  ;;  %v442_v43 = vadd.f32 %v441_v25, %v1566_v6 }
 0x1ee   : > { %v606_v45 = vpop.permute.xlu0 %605 }
 0x1ef   : > { %v608_v46 = vadd.f32 %v606_v45, %v598_v44  ;;  %v444_v44 = vadd.f32 %v443_v26, %v1640_v24 }
 0x1f1   : > { %1412 = vtanh.f32 %v608_v46 }
 0x1f2   : > { %1414 = vpow2.f32 %v1341_v48 }
 0x1fb   : > { %v1413_v47 = vpop.eup %1412 }
 0x1fc   : > { %611 = vrot.lane.b32.xlu1 %v1413_v47, %s1513_s7  ;;  %v1415_v49 = vpop.eup %1414 }
 0x1fd   : > { %v592_v50 = vadd.f32 1.0, %v1415_v49 }
 0x1ff   : > { %1416 = vrcp.f32 %v592_v50 }
 0x209   : > { %v1417_v51 = vpop.eup %1416 }
 0x26e   : > { %v612_v52 = vpop.permute.xlu1 %611 }
 0x26f   : > { %v1647_v53 = vmul.f32 %v1417_v51, %v612_v52 }
 0x271   : > { %v620_v54 = vpack.c.bf16 %v1647_v53, %v1647_v53 }
 0x273   : > { %1342 = vmatmul.mubr.msk.bf16.vlgmr.msra.gmra.mrb[4].mxu1 %vm384_vm0, %v620_v54 }
 0x274   : > { %791 = vmatpush1.bf16.msra.mxu1 %v1573_v9  ;;  %822 = vmatprep.mubr.bf16.mxu1 %v1512_v1 }
 0x275   : > { %792 = vmatprep.subr.bf16.mxu1 %v1581_v11 }
 0x278   : > { %793 = vmatpush1.bf16.msra.mxu1 %v1586_v13 }
 0x279   : > { %794 = vmatprep.subr.bf16.mxu1 %v1591_v15 }
 0x27c   : > { %795 = vmatpush1.bf16.msra.mxu1 %v1596_v17 }
 0x27d   : > { %796 = vmatprep.subr.bf16.mxu1 %v1602_v19 }
 0x280   : > { %797 = vmatpush1.bf16.msra.mxu1 %v1611_v21 }
 0x281   : > { %956 = vmatprep.subr.bf16.mxu1 %v1569_v7 }
 0x346   : > { %v658_v57 = vpop.f32.mrb[4].mxu1 }
 0x347   : > { %v665_v58 = vadd.f32 %v658_v57, %v436_v55  ;;  %v660_v59 = vpop.f32.mrb[5].mxu1 }
 0x348   : > { %v666_v60 = vadd.f32 %v660_v59, %v438_v56  ;;  %v662_v61 = vpop.f32.mrb[6].mxu1 }
 0x349   : > { %v663_v62 = vpop.f32.mrb[7].mxu1  ;;  %v1343_v0 = vmul.f32 -1.442695, %v665_v58 }
 0x34a   : > { %1418 = vtanh.f32 %v666_v60  ;;  %v1344_v23 = vmul.f32 -1.442695, %v666_v60 }
 0x34b   : > { %1420 = vpow2.f32 %v1343_v0 }
 0x354   : > { %v1419_v63 = vpop.eup %1418 }
 0x355   : > { %682 = vrot.lane.b32.xlu1 %v1419_v63, %s1513_s7  ;;  %v1421_v2 = vpop.eup %1420 }
 0x356   : > { %v673_v3 = vadd.f32 1.0, %v1421_v2 }
 0x358   : > { %1422 = vrcp.f32 %v673_v3 }
 0x362   : > { %v1423_v4 = vpop.eup %1422 }
 0x363   : > { %v680_v16 = vmul.f32 %v1423_v4, %v608_v46 }
 0x3c7   : > { %v683_v5 = vpop.permute.xlu1 %682 }
 0x3c8   : > { %v685_v8 = vmul.f32 %v1423_v4, %v683_v5 }
 0x3ca   : > { %687 = vrot.lane.b32.xlu0 %v685_v8, %s1513_s7 }
 0x43c   : > { %v688_v18 = vpop.permute.xlu0 %687 }
 0x43d   : > { %v690_v20 = vadd.f32 %v688_v18, %v680_v16 }
 0x43f   : > { %1424 = vtanh.f32 %v690_v20 }
 0x440   : > { %1426 = vpow2.f32 %v1344_v23 }
 0x449   : > { %v1425_v22 = vpop.eup %1424 }
 0x44a   : > { %693 = vrot.lane.b32.xlu1 %v1425_v22, %s1513_s7  ;;  %v1427_v33 = vpop.eup %1426 }
 0x44b   : > { %v674_v34 = vadd.f32 1.0, %v1427_v33 }
 0x44d   : > { %1428 = vrcp.f32 %v674_v34 }
 0x457   : > { %v1429_v39 = vpop.eup %1428 }
 0x4bc   : > { %v694_v40 = vpop.permute.xlu1 %693 }
 0x4bd   : > { %v696_v41 = vmul.f32 %v1429_v39, %v694_v40 }
 0x4bf   : > { %v703_v42 = vpack.c.bf16 %v696_v41, %v696_v41  ;;  %v697_v5 = vmax.f32 %v1647_v53, %v696_v41  ;;  %v446_v53 = vadd.f32 %v1675_v27, %v1566_v6 }
 0x4c1   : > { %1345 = vmatmul.mubr.msk.bf16.vlgmr.msra.gmra.mrb[16].mxu0 %vm384_vm0, %v703_v42 }
 0x4c2   : > { %874 = vmatpush1.bf16.msra.mxu0 %v1573_v9  ;;  %905 = vmatprep.mubr.bf16.mxu0 %v1512_v1 }
 0x4c3   : > { %875 = vmatprep.subr.bf16.mxu0 %v1581_v11 }
 0x4c6   : > { %876 = vmatpush1.bf16.msra.mxu0 %v1586_v13 }
 0x4c7   : > { %877 = vmatprep.subr.bf16.mxu0 %v1591_v15 }
 0x4ca   : > { %878 = vmatpush1.bf16.msra.mxu0 %v1596_v17 }
 0x4cb   : > { %879 = vmatprep.subr.bf16.mxu0 %v1602_v19 }
 0x4ce   : > { %880 = vmatpush1.bf16.msra.mxu0 %v1611_v21 }
 0x4cf   : > { %1039 = vmatprep.subr.bf16.mxu0 %v1569_v7 }
 0x594   : > { %v741_v45 = vpop.f32.mrb[16].mxu0 }
 0x595   : > { %v748_v46 = vadd.f32 %v741_v45, %v442_v43  ;;  %v743_v47 = vpop.f32.mrb[17].mxu0 }
 0x596   : > { %v749_v48 = vadd.f32 %v743_v47, %v444_v44  ;;  %v745_v49 = vpop.f32.mrb[18].mxu0 }
 0x597   : > { %v746_v50 = vpop.f32.mrb[19].mxu0  ;;  %v1346_v52 = vmul.f32 -1.442695, %v748_v46 }
 0x598   : > { %1430 = vtanh.f32 %v749_v48  ;;  %v1347_v63 = vmul.f32 -1.442695, %v749_v48 }
 0x599   : > { %1432 = vpow2.f32 %v1346_v52  ;;  %v452_v52 = vadd.f32 %v1679_v29, %v1566_v6 }
 0x5a2   : > { %v1431_v51 = vpop.eup %1430 }
 0x5a3   : > { %765 = vrot.lane.b32.xlu0 %v1431_v51, %s1513_s7  ;;  %v1433_v54 = vpop.eup %1432 }
 0x5a4   : > { %v756_v55 = vadd.f32 1.0, %v1433_v54  ;;  %v454_v54 = vadd.f32 %v1681_v30, %v1640_v24 }
 0x5a6   : > { %1434 = vrcp.f32 %v756_v55 }
 0x5b0   : > { %v1435_v56 = vpop.eup %1434 }
 0x5b1   : > { %v763_v59 = vmul.f32 %v1435_v56, %v690_v20 }
 0x615   : > { %v766_v57 = vpop.permute.xlu0 %765 }
 0x616   : > { %v768_v58 = vmul.f32 %v1435_v56, %v766_v57 }
 0x618   : > { %770 = vrot.lane.b32.xlu1 %v768_v58, %s1513_s7 }
 0x68a   : > { %v771_v60 = vpop.permute.xlu1 %770 }
 0x68b   : > { %v773_v61 = vadd.f32 %v771_v60, %v763_v59 }
 0x68d   : > { %1436 = vtanh.f32 %v773_v61 }
 0x68e   : > { %1438 = vpow2.f32 %v1347_v63 }
 0x697   : > { %v1437_v62 = vpop.eup %1436 }
 0x698   : > { %776 = vrot.lane.b32.xlu0 %v1437_v62, %s1513_s7  ;;  %v1439_v0 = vpop.eup %1438 }
 0x699   : > { %v757_v2 = vadd.f32 1.0, %v1439_v0 }
 0x69b   : > { %1440 = vrcp.f32 %v757_v2 }
 0x6a5   : > { %v1441_v3 = vpop.eup %1440 }
 0x70a   : > { %v777_v4 = vpop.permute.xlu0 %776 }
 0x70b   : > { %v779_v8 = vmul.f32 %v1441_v3, %v777_v4 }
 0x70d   : > { %v1711_v10 = vmax.f32 %v697_v5, %v779_v8  ;;  %v786_v12 = vpack.c.bf16 %v779_v8, %v779_v8 }
 0x70f   : > { %1348 = vmatmul.mubr.msk.bf16.vlgmr.msra.gmra.mrb[8].mxu1 %vm384_vm0, %v786_v12 }
 0x710   : > { %957 = vmatpush1.bf16.msra.mxu1 %v1573_v9  ;;  %988 = vmatprep.mubr.bf16.mxu1 %v1512_v1 }
 0x711   : > { %958 = vmatprep.subr.bf16.mxu1 %v1581_v11 }
 0x714   : > { %959 = vmatpush1.bf16.msra.mxu1 %v1586_v13 }
 0x715   : > { %960 = vmatprep.subr.bf16.mxu1 %v1591_v15 }
 0x718   : > { %961 = vmatpush1.bf16.msra.mxu1 %v1596_v17 }
 0x719   : > { %962 = vmatprep.subr.bf16.mxu1 %v1602_v19 }
 0x71c   : > { %963 = vmatpush1.bf16.msra.mxu1 %v1611_v21 }
 0x71d   : > { %1122 = vmatprep.subr.bf16.mxu1 %v1569_v7 }
 0x7e2   : > { %v824_v16 = vpop.f32.mrb[8].mxu1 }
 0x7e3   : > { %v831_v18 = vadd.f32 %v824_v16, %v446_v53  ;;  %v826_v20 = vpop.f32.mrb[9].mxu1 }
 0x7e4   : > { %v832_v22 = vadd.f32 %v826_v20, %v448_v14  ;;  %v828_v23 = vpop.f32.mrb[10].mxu1 }
 0x7e5   : > { %v829_v25 = vpop.f32.mrb[11].mxu1  ;;  %v1349_v33 = vmul.f32 -1.442695, %v831_v18  ;;  %v456_v23 = vadd.f32 %v1683_v31, %v1566_v6 }
 0x7e6   : > { %1442 = vtanh.f32 %v832_v22  ;;  %v1350_v44 = vmul.f32 -1.442695, %v832_v22 }
 0x7e7   : > { %1444 = vpow2.f32 %v1349_v33 }
 0x7f0   : > { %v1443_v26 = vpop.eup %1442 }
 0x7f1   : > { %848 = vrot.lane.b32.xlu1 %v1443_v26, %s1513_s7  ;;  %v1445_v34 = vpop.eup %1444 }
 0x7f2   : > { %v839_v7 = vadd.f32 1.0, %v1445_v34 }
 0x7f4   : > { %1446 = vrcp.f32 %v839_v7 }
 0x7fe   : > { %v1447_v39 = vpop.eup %1446 }
 0x7ff   : > { %v846_v28 = vmul.f32 %v1447_v39, %v773_v61 }
 0x863   : > { %v849_v27 = vpop.permute.xlu1 %848 }
 0x864   : > { %v851_v40 = vmul.f32 %v1447_v39, %v849_v27 }
 0x866   : > { %853 = vrot.lane.b32.xlu0 %v851_v40, %s1513_s7 }
 0x8d8   : > { %v854_v41 = vpop.permute.xlu0 %853 }
 0x8d9   : > { %v856_v42 = vadd.f32 %v854_v41, %v846_v28 }
 0x8db   : > { %1448 = vtanh.f32 %v856_v42 }
 0x8dc   : > { %1450 = vpow2.f32 %v1350_v44 }
 0x8e5   : > { %v1449_v43 = vpop.eup %1448 }
 0x8e6   : > { %859 = vrot.lane.b32.xlu1 %v1449_v43, %s1513_s7  ;;  %v1451_v45 = vpop.eup %1450 }
 0x8e7   : > { %v840_v46 = vadd.f32 1.0, %v1451_v45 }
 0x8e9   : > { %1452 = vrcp.f32 %v840_v46 }
 0x8f3   : > { %v1453_v47 = vpop.eup %1452 }
 0x958   : > { %v860_v48 = vpop.permute.xlu1 %859 }
 0x959   : > { %v862_v49 = vmul.f32 %v1453_v47, %v860_v48  ;;  %v462_v48 = vadd.f32 %v1687_v35, %v1566_v6 }
 0x95b   : > { %v863_v50 = vmax.f32 %v1711_v10, %v862_v49  ;;  %v869_v51 = vpack.c.bf16 %v862_v49, %v862_v49  ;;  %v464_v49 = vadd.f32 %v1689_v36, %v1640_v24 }
 0x95d   : > { %1351 = vmatmul.mubr.msk.bf16.vlgmr.msra.gmra.mrb[20].mxu0 %vm384_vm0, %v869_v51 }
 0x95e   : > { %1040 = vmatpush1.bf16.msra.mxu0 %v1573_v9  ;;  %1071 = vmatprep.mubr.bf16.mxu0 %v1512_v1 }
 0x95f   : > { %1041 = vmatprep.subr.bf16.mxu0 %v1581_v11 }
 0x962   : > { %1042 = vmatpush1.bf16.msra.mxu0 %v1586_v13 }
 0x963   : > { %1043 = vmatprep.subr.bf16.mxu0 %v1591_v15 }
 0x966   : > { %1044 = vmatpush1.bf16.msra.mxu0 %v1596_v17 }
 0x967   : > { %1045 = vmatprep.subr.bf16.mxu0 %v1602_v19 }
 0x96a   : > { %1046 = vmatpush1.bf16.msra.mxu0 %v1611_v21 }
 0xa30   : > { %v907_v55 = vpop.f32.mrb[20].mxu0 }
 0xa31   : > { %v914_v56 = vadd.f32 %v907_v55, %v452_v52  ;;  %v909_v57 = vpop.f32.mrb[21].mxu0 }
 0xa32   : > { %v915_v58 = vadd.f32 %v909_v57, %v454_v54  ;;  %v911_v59 = vpop.f32.mrb[22].mxu0 }
 0xa33   : > { %v912_v60 = vpop.f32.mrb[23].mxu0  ;;  %v1352_v62 = vmul.f32 -1.442695, %v914_v56 }
 0xa34   : > { %1454 = vtanh.f32 %v915_v58  ;;  %v1353_v10 = vmul.f32 -1.442695, %v915_v58 }
 0xa35   : > { %1456 = vpow2.f32 %v1352_v62 }
 0xa3e   : > { %v1455_v61 = vpop.eup %1454 }
 0xa3f   : > { %931 = vrot.lane.b32.xlu0 %v1455_v61, %s1513_s7  ;;  %v1457_v63 = vpop.eup %1456 }
 0xa40   : > { %v922_v0 = vadd.f32 1.0, %v1457_v63 }
 0xa42   : > { %1458 = vrcp.f32 %v922_v0 }
 0xa4c   : > { %v1459_v2 = vpop.eup %1458 }
 0xa4d   : > { %v929_v30 = vmul.f32 %v1459_v2, %v856_v42 }
 0xab1   : > { %v932_v29 = vpop.permute.xlu0 %931 }
 0xab2   : > { %v934_v3 = vmul.f32 %v1459_v2, %v932_v29 }
 0xab4   : > { %936 = vrot.lane.b32.xlu1 %v934_v3, %s1513_s7 }
 0xb26   : > { %v937_v4 = vpop.permute.xlu1 %936 }
 0xb27   : > { %v939_v5 = vadd.f32 %v937_v4, %v929_v30 }
 0xb29   : > { %1460 = vtanh.f32 %v939_v5 }
 0xb2a   : > { %1462 = vpow2.f32 %v1353_v10 }
 0xb33   : > { %v1461_v8 = vpop.eup %1460 }
 0xb34   : > { %942 = vrot.lane.b32.xlu0 %v1461_v8, %s1513_s7  ;;  %v1463_v12 = vpop.eup %1462 }
 0xb35   : > { %v923_v53 = vadd.f32 1.0, %v1463_v12 }
 0xb37   : > { %1464 = vrcp.f32 %v923_v53  ;;  %v466_v53 = vadd.f32 %v1691_v37, %v1566_v6 }
 0xb41   : > { %v1465_v14 = vpop.eup %1464 }
 0xba6   : > { %v943_v16 = vpop.permute.xlu0 %942 }
 0xba7   : > { %v945_v18 = vmul.f32 %v1465_v14, %v943_v16  ;;  %v468_v14 = vadd.f32 %v1693_v38, %v1640_v24 }
 0xba9   : > { %v1747_v20 = vmax.f32 %v863_v50, %v945_v18  ;;  %v952_v22 = vpack.c.bf16 %v945_v18, %v945_v18 }
 0xbab   : > { %1354 = vmatmul.mubr.msk.bf16.vlgmr.msra.gmra.mrb[12].mxu1 %vm384_vm0, %v952_v22 }
 0xbac   : > { %1123 = vmatpush1.bf16.msra.mxu1 %v1573_v9  ;;  %1154 = vmatprep.mubr.bf16.mxu1 %v1512_v1  ;;  %v458_v9 = vadd.f32 %v1685_v32, %v1640_v24 }
 0xbad   : > { %1124 = vmatprep.subr.bf16.mxu1 %v1581_v11 }
 0xbb0   : > { %1125 = vmatpush1.bf16.msra.mxu1 %v1586_v13 }
 0xbb1   : > { %1126 = vmatprep.subr.bf16.mxu1 %v1591_v15 }
 0xbb4   : > { %1127 = vmatpush1.bf16.msra.mxu1 %v1596_v17 }
 0xbb5   : > { %1128 = vmatprep.subr.bf16.mxu1 %v1602_v19 }
 0xbb8   : > { %1129 = vmatpush1.bf16.msra.mxu1 %v1611_v21 }
 0xc7e   : > { %v990_v25 = vpop.f32.mrb[12].mxu1 }
 0xc7f   : > { %v997_v1 = vadd.f32 %v990_v25, %v456_v23  ;;  %v992_v26 = vpop.f32.mrb[13].mxu1 }
 0xc80   : > { %v998_v11 = vadd.f32 %v992_v26, %v458_v9  ;;  %v994_v33 = vpop.f32.mrb[14].mxu1 }
 0xc81   : > { %v995_v13 = vpop.f32.mrb[15].mxu1  ;;  %v1355_v17 = vmul.f32 -1.442695, %v997_v1 }
 0xc82   : > { %1466 = vtanh.f32 %v998_v11  ;;  %v1356_v28 = vmul.f32 -1.442695, %v998_v11 }
 0xc83   : > { %1468 = vpow2.f32 %v1355_v17 }
 0xc8c   : > { %v1467_v15 = vpop.eup %1466 }
 0xc8d   : > { %1014 = vrot.lane.b32.xlu1 %v1467_v15, %s1513_s7  ;;  %v1469_v19 = vpop.eup %1468 }
 0xc8e   : > { %v1005_v21 = vadd.f32 1.0, %v1469_v19 }
 0xc90   : > { %1470 = vrcp.f32 %v1005_v21 }
 0xc9a   : > { %v1471_v34 = vpop.eup %1470 }
 0xc9b   : > { %v1012_v32 = vmul.f32 %v1471_v34, %v939_v5 }
 0xcff   : > { %v1015_v31 = vpop.permute.xlu1 %1014 }
 0xd00   : > { %v1017_v7 = vmul.f32 %v1471_v34, %v1015_v31 }
 0xd02   : > { %1019 = vrot.lane.b32.xlu0 %v1017_v7, %s1513_s7 }
 0xd74   : > { %v1020_v39 = vpop.permute.xlu0 %1019 }
 0xd75   : > { %v1022_v27 = vadd.f32 %v1020_v39, %v1012_v32 }
 0xd77   : > { %1472 = vtanh.f32 %v1022_v27 }
 0xd78   : > { %1474 = vpow2.f32 %v1356_v28 }
 0xd81   : > { %v1473_v40 = vpop.eup %1472 }
 0xd82   : > { %1025 = vrot.lane.b32.xlu1 %v1473_v40, %s1513_s7  ;;  %v1475_v41 = vpop.eup %1474 }
 0xd83   : > { %v1006_v42 = vadd.f32 1.0, %v1475_v41 }
 0xd85   : > { %1476 = vrcp.f32 %v1006_v42 }
 0xd8f   : > { %v1477_v43 = vpop.eup %1476 }
 0xdf4   : > { %v1026_v44 = vpop.permute.xlu1 %1025 }
 0xdf5   : > { %v1028_v45 = vmul.f32 %v1477_v43, %v1026_v44 }
 0xdf7   : > { %v1029_v46 = vmax.f32 %v1747_v20, %v1028_v45  ;;  %v1035_v47 = vpack.c.bf16 %v1028_v45, %v1028_v45 }
 0xdf9   : > { %1357 = vmatmul.mubr.msk.bf16.vlgmr.msra.gmra.mrb[24].mxu0 %vm384_vm0, %v1035_v47 }
 0xecc   : > { %v1073_v50 = vpop.f32.mrb[24].mxu0 }
 0xecd   : > { %v1080_v51 = vadd.f32 %v1073_v50, %v462_v48  ;;  %v1075_v52 = vpop.f32.mrb[25].mxu0 }
 0xece   : > { %v1081_v54 = vadd.f32 %v1075_v52, %v464_v49  ;;  %v1077_v55 = vpop.f32.mrb[26].mxu0 }
 0xecf   : > { %v1078_v56 = vpop.f32.mrb[27].mxu0  ;;  %v1358_v58 = vmul.f32 -1.442695, %v1080_v51 }
 0xed0   : > { %1478 = vtanh.f32 %v1081_v54  ;;  %v1359_v29 = vmul.f32 -1.442695, %v1081_v54 }
 0xed1   : > { %1480 = vpow2.f32 %v1358_v58 }
 0xeda   : > { %v1479_v57 = vpop.eup %1478 }
 0xedb   : > { %1097 = vrot.lane.b32.xlu0 %v1479_v57, %s1513_s7  ;;  %v1481_v59 = vpop.eup %1480 }
 0xedc   : > { %v1088_v60 = vadd.f32 1.0, %v1481_v59 }
 0xede   : > { %1482 = vrcp.f32 %v1088_v60 }
 0xee8   : > { %v1483_v61 = vpop.eup %1482 }
 0xee9   : > { %v1095_v36 = vmul.f32 %v1483_v61, %v1022_v27 }
 0xf4d   : > { %v1098_v35 = vpop.permute.xlu0 %1097 }
 0xf4e   : > { %v1100_v62 = vmul.f32 %v1483_v61, %v1098_v35 }
 0xf50   : > { %1102 = vrot.lane.b32.xlu1 %v1100_v62, %s1513_s7 }
 0xfc2   : > { %v1103_v63 = vpop.permute.xlu1 %1102 }
 0xfc3   : > { %v1105_v0 = vadd.f32 %v1103_v63, %v1095_v36 }
 0xfc5   : > { %1484 = vtanh.f32 %v1105_v0 }
 0xfc6   : > { %1486 = vpow2.f32 %v1359_v29 }
 0xfcf   : > { %v1485_v2 = vpop.eup %1484 }
 0xfd0   : > { %1108 = vrot.lane.b32.xlu0 %v1485_v2, %s1513_s7  ;;  %v1487_v3 = vpop.eup %1486 }
 0xfd1   : > { %v1089_v30 = vadd.f32 1.0, %v1487_v3 }
 0xfd3   : > { %1488 = vrcp.f32 %v1089_v30 }
 0xfdd   : > { %v1489_v4 = vpop.eup %1488 }
0x1042   : > { %v1109_v5 = vpop.permute.xlu0 %1108 }
0x1043   : > { %v1111_v8 = vmul.f32 %v1489_v4, %v1109_v5 }
0x1045   : > { %v1112_v10 = vmax.f32 %v1029_v46, %v1111_v8  ;;  %v1118_v12 = vpack.c.bf16 %v1111_v8, %v1111_v8 }
0x1047   : > { %1360 = vmatmul.mubr.msk.bf16.vlgmr.msra.gmra.mrb[16].mxu1 %vm384_vm0, %v1118_v12 }
0x111a   : > { %v1156_v16 = vpop.f32.mrb[16].mxu1 }
0x111b   : > { %v1163_v18 = vadd.f32 %v1156_v16, %v466_v53  ;;  %v1158_v20 = vpop.f32.mrb[17].mxu1 }
0x111c   : > { %v1164_v22 = vadd.f32 %v1158_v20, %v468_v14  ;;  %v1160_v23 = vpop.f32.mrb[18].mxu1 }
0x111d   : > { %v1161_v9 = vpop.f32.mrb[19].mxu1  ;;  %v1361_v1 = vmul.f32 -1.442695, %v1163_v18 }
0x111e   : > { %1490 = vtanh.f32 %v1164_v22  ;;  %v1362_v17 = vmul.f32 -1.442695, %v1164_v22 }
0x111f   : > { %1492 = vpow2.f32 %v1361_v1 }
0x1128   : > { %v1491_v25 = vpop.eup %1490 }
0x1129   : > { %1180 = vrot.lane.b32.xlu1 %v1491_v25, %s1513_s7  ;;  %v1493_v26 = vpop.eup %1492 }
0x112a   : > { %v1171_v11 = vadd.f32 1.0, %v1493_v26 }
0x112c   : > { %1494 = vrcp.f32 %v1171_v11 }
0x1136   : > { %v1495_v33 = vpop.eup %1494 }
0x1137   : > { %v1178_v24 = vmul.f32 %v1495_v33, %v1105_v0 }
0x119b   : > { %v1181_v6 = vpop.permute.xlu1 %1180 }
0x119c   : > { %v1183_v37 = vmul.f32 %v1495_v33, %v1181_v6 }
0x119e   : > { %1185 = vrot.lane.b32.xlu0 %v1183_v37, %s1513_s7 }
0x1210   : > { %v1186_v38 = vpop.permute.xlu0 %1185 }
0x1211   : > { %v1188_v13 = vadd.f32 %v1186_v38, %v1178_v24 }
0x1213   : > { %1496 = vtanh.f32 %v1188_v13 }
0x1214   : > { %1498 = vpow2.f32 %v1362_v17 }
0x121d   : > { %v1497_v15 = vpop.eup %1496 }
0x121e   : > { %1191 = vrot.lane.b32.xlu1 %v1497_v15, %s1513_s7  ;;  %v1499_v19 = vpop.eup %1498 }
0x121f   : > { %v1172_v21 = vadd.f32 1.0, %v1499_v19 }
0x1221   : > { %1500 = vrcp.f32 %v1172_v21 }
0x122b   : > { %v1501_v34 = vpop.eup %1500 }
0x1290   : > { %v1192_v31 = vpop.permute.xlu1 %1191 }
0x1291   : > { %v1194_v7 = vmul.f32 %v1501_v34, %v1192_v31 }
0x1293   : > { %v1195_v32 = vmax.f32 %v1112_v10, %v1194_v7 }
0x1295   : > { %1502 = vtanh.f32 %v1195_v32 }
0x129f   : > { %v1503_v39 = vpop.eup %1502 }
0x12a0   : > { %1197 = vst.msk [vmem:[%s294_s11] sm:$0xff] %vm384_vm0, %v1503_v39 }
0x12a1 PF: > { %s14_s15 = sadd.s32 1, %s1510_s15  }
0x12a2   : > { %p11_p5 = scmp.ge.s32.totalorder %s14_s15, 7  }
0x12a4   :  { %13 = sbr.rel (!%p11_p5) target bundleno = 1 (0x1), region = 83 }

</bundles_post_ra>
